<compile_context>
chip_gen: v7x
topology: tpu7x:2x2x1
jax: 0.10.0
libtpu: 0.0.40
codegen_flags: <defaults>
</compile_context>

<pallas_src>
import math

import jax
import jax.numpy as jnp
from jax.experimental import pallas as pl
from jax.experimental.pallas import tpu as pltpu


def _round_up(x, m):
    return -(-x // m) * m


def _make_opn_kernel(col_pad, D, G, NG, precision):
    """Build the kernel body with static pair indices / packing factors."""
    GD = G * D

    def kernel_fn(x_ref, kbd_ref, seg_ref, o_ref):
        # x_ref:   (TB, F*D)       lane-dense batch tile
        # kbd_ref: (NG, F*D, G*D)  p-gather-folded packed weight (resident)
        # seg_ref: (G*D, G)        segment-sum matrix (resident, trace-time)
        # o_ref:   (TB, Npad)      output block (pair index on the lane axis)
        x = x_ref[...]
        seg = seg_ref[...]

        outs = []
        for g in range(NG):
            # kp[b, k*D+d] = sum_e x[b, row_k, e] * K[d, n_k, e]
            # (the pair row-gather rides along as zeros inside kbd)
            kp = jnp.dot(x, kbd_ref[g],
                         preferred_element_type=jnp.float32,
                         precision=precision)                        # (TB, GD)
            # q-gather: static lane slices of the flat x tile.
            q = jnp.concatenate(
                [x[:, c * D:(c + 1) * D]
                 for c in col_pad[g * G:(g + 1) * G]], axis=-1)      # (TB, GD)
            t = kp * q.astype(jnp.float32)
            # out[b, k] = sum_d t[b, k*D+d]  via a tiny MXU matmul
            outs.append(jnp.dot(t, seg,
                                preferred_element_type=jnp.float32,
                                precision=precision))                # (TB, G)
        out = outs[0] if NG == 1 else jnp.concatenate(outs, axis=-1)
        o_ref[...] = out.astype(o_ref.dtype)

    return kernel_fn


def outer_product_network_mat(x, kernel, row, col, *, block_b=None,
                              precision=jax.lax.Precision.HIGHEST):
    """x: (B, F, D); kernel: (D, N, D); row/col: static Python index lists.

    Returns out: (B, N) matching the PyTorch 'mat' forward.
    """
    B, F, D = x.shape
    N = len(row)
    assert kernel.shape == (D, N, D), kernel.shape

    # Lane packing: G pairs share the lane axis of one MXU matmul.  Target 256
    # lanes (full v6e/v7x MXU width; two passes on v5e's 128-wide MXU).
    if D <= 256 and 256 % D == 0:
        G = 256 // D
    elif D <= 128 and 128 % D == 0:
        G = 128 // D
    else:
        G = 1  # TODO(synk): perf cliff (masked matmul) when D doesn't divide 128/256
    Npad = _round_up(N, G)
    NG = Npad // G
    GD = G * D
    FD = F * D

    row_pad = tuple(row) + (0,) * (Npad - N)
    col_pad = tuple(col) + (0,) * (Npad - N)

    # Packed weight with the p-side gather folded in:
    #   kbd[g, f*D+e, k*D+d] = K[d, g*G+k, e] if f == row[g*G+k] else 0
    kt = jnp.transpose(kernel, (1, 2, 0))                # (N, D, D): kt[n,e,d] = K[d,n,e]
    kt = jnp.pad(kt, ((0, Npad - N), (0, 0), (0, 0)))    # zero-pad fake pairs
    ktg = kt.reshape(NG, G, D, D)                        # ktg[g,k,e,d]
    row_arr = jnp.asarray(row_pad, dtype=jnp.int32).reshape(NG, G)
    sel = (row_arr[:, :, None] ==
           jnp.arange(F, dtype=jnp.int32)[None, None, :]).astype(kernel.dtype)  # (NG,G,F)
    kbd = jnp.einsum('gked,gkf->gfekd', ktg, sel).reshape(NG, FD, GD)

    # Segment-sum matrix (trace-time constant): seg[k*D+d, k'] = (k == k').
    rows_i = jax.lax.broadcasted_iota(jnp.int32, (GD, G), 0) // D
    cols_i = jax.lax.broadcasted_iota(jnp.int32, (GD, G), 1)
    seg = (rows_i == cols_i).astype(jnp.float32)

    # Batch tiling: large tiles amortize the ~0.35 us/step pipeline overhead;
    # cap so realistic batches still give >= 2 grid steps (v7x has 2 TCs).
    if block_b is None:
        block_b = min(2048, _round_up(B, 8))
        if B > 8:
            block_b = min(block_b, max(8, _round_up(-(-B // 2), 8)))
    B_pad = _round_up(B, block_b)

    x_flat = jnp.pad(x.reshape(B, FD), ((0, B_pad - B), (0, 0)))

    grid = (B_pad // block_b,)
    out_dtype = x.dtype

    flops = 2 * B_pad * NG * (FD * GD + GD * G)
    bytes_accessed = (int(x_flat.size) * x_flat.dtype.itemsize
                      + int(kbd.size) * kbd.dtype.itemsize
                      + int(seg.size) * seg.dtype.itemsize
                      + B_pad * Npad * jnp.dtype(out_dtype).itemsize)

    kernel_fn = _make_opn_kernel(col_pad, D, G, NG, precision)

    out = pl.pallas_call(
        kernel_fn,
        out_shape=jax.ShapeDtypeStruct((B_pad, Npad), out_dtype),
        grid_spec=pltpu.PrefetchScalarGridSpec(
            num_scalar_prefetch=0,
            grid=grid,
            in_specs=[
                pl.BlockSpec((block_b, FD), lambda b: (b, 0)),
                # Constant index_maps: weight and seg are DMA'd once and stay
                # resident across all batch tiles.
                pl.BlockSpec((NG, FD, GD), lambda b: (0, 0, 0)),
                pl.BlockSpec((GD, G), lambda b: (0, 0)),
            ],
            out_specs=pl.BlockSpec((block_b, Npad), lambda b: (b, 0)),
        ),
        compiler_params=pltpu.CompilerParams(
            dimension_semantics=("parallel",),
        ),
        cost_estimate=pl.CostEstimate(
            flops=int(flops), transcendentals=0,
            bytes_accessed=int(bytes_accessed)),
    )(x_flat, kbd, seg)

    return out[:B, :N]


def reference_opn_mat(x, kernel, row, col):
    """Pure-JAX reference mirroring the PyTorch forward."""
    row = jnp.asarray(row, dtype=jnp.int32)
    col = jnp.asarray(col, dtype=jnp.int32)
    p = x[:, row]                                         # (B, N, D)
    q = x[:, col]                                         # (B, N, D)
    kp = jnp.sum(p[:, None, :, :] * kernel[None], -1)     # (B, D, N)
    kp = jnp.transpose(kp, (0, 2, 1))                     # (B, N, D)
    return jnp.sum(kp * q, -1)                            # (B, N)


if __name__ == "__main__":
    # Small shapes consistent with the module (batch >= 8 fills the sublanes).
    batch = 8
    num_fields = 4
    embed_dim = 32
    num_ix = num_fields * (num_fields - 1) // 2           # 6

    row, col = [], []
    for i in range(num_fields - 1):
        for j in range(i + 1, num_fields):
            row.append(i)
            col.append(j)

    key = jax.random.PRNGKey(0)
    kx, kk = jax.random.split(key)

    x = jax.random.normal(kx, (batch, num_fields, embed_dim), dtype=jnp.float32)

    # Deterministic xavier_uniform init for kernel of shape (D, N, D):
    # torch fan_in = N * D, fan_out = D * D, bound = sqrt(6 / (fan_in + fan_out)).
    fan_in = num_ix * embed_dim
    fan_out = embed_dim * embed_dim
    bound = math.sqrt(6.0 / (fan_in + fan_out))
    kernel = jax.random.uniform(
        kk, (embed_dim, num_ix, embed_dim),
        minval=-bound, maxval=bound, dtype=jnp.float32,
    )

    out = outer_product_network_mat(x, kernel, row, col)
    out = jax.block_until_ready(out)

    ref = reference_opn_mat(x, kernel, row, col)
    assert out.shape == (batch, num_ix), out.shape
    assert jnp.allclose(out, ref, atol=1e-4, rtol=1e-4), (out, ref)

    print("KERNEL_OK")
</pallas_src>

<mosaic_0001>
module attributes {stable_mosaic.version = 11 : i64} {
  func.func @kernel_fn(%arg0: i32, %arg1: memref<8x128xf32, #tpu.memory_space<vmem>>, %arg2: memref<1x128x256xf32, #tpu.memory_space<vmem>>, %arg3: memref<256x8xf32, #tpu.memory_space<vmem>>, %arg4: memref<8x8xf32, #tpu.memory_space<vmem>>) attributes {dimension_semantics = [#tpu.dimension_semantics<parallel>], iteration_bounds = array<i64: 1>, scalar_prefetch = 0 : i64, scratch_operands = 0 : i64, tpu.core_type = #tpu.core_type<tc>, window_params = [{transform_indices = @transform_0, window_bounds = array<i64: 8, 128>}, {pipeline_mode = #tpu.pipeline_mode<synchronous>, transform_indices = @transform_1, window_bounds = array<i64: 1, 128, 256>}, {pipeline_mode = #tpu.pipeline_mode<synchronous>, transform_indices = @transform_2, window_bounds = array<i64: 256, 8>}, {transform_indices = @transform_3, window_bounds = array<i64: 8, 8>}]} {
    %c0 = arith.constant 0 : index
    %c0_0 = arith.constant 0 : index
    %0 = vector.load %arg1[%c0, %c0_0] : memref<8x128xf32, #tpu.memory_space<vmem>>, vector<8x128xf32>
    %c0_1 = arith.constant 0 : index
    %c0_2 = arith.constant 0 : index
    %1 = vector.load %arg3[%c0_1, %c0_2] : memref<256x8xf32, #tpu.memory_space<vmem>>, vector<256x8xf32>
    %c0_3 = arith.constant 0 : index
    %c0_4 = arith.constant 0 : index
    %c0_5 = arith.constant 0 : index
    %2 = vector.load %arg2[%c0_3, %c0_4, %c0_5] : memref<1x128x256xf32, #tpu.memory_space<vmem>>, vector<1x128x256xf32>
    %3 = vector.shape_cast %2 : vector<1x128x256xf32> to vector<128x256xf32>
    %cst = arith.constant dense<0.000000e+00> : vector<8x256xf32>
    %4 = tpu.matmul %0, %3, %cst {dimension_numbers = #tpu.dot_dimension_numbers<[1], [0], [0], [1], [0, 0, 1, 1], [], []>, precision = #tpu.contract_precision<fp32>} : vector<8x128xf32>, vector<128x256xf32>, vector<8x256xf32> -> vector<8x256xf32>
    %5 = vector.extract_strided_slice %0 {offsets = [0, 32], sizes = [8, 32], strides = [1, 1]} : vector<8x128xf32> to vector<8x32xf32>
    %6 = vector.extract_strided_slice %0 {offsets = [0, 64], sizes = [8, 32], strides = [1, 1]} : vector<8x128xf32> to vector<8x32xf32>
    %7 = vector.extract_strided_slice %0 {offsets = [0, 96], sizes = [8, 32], strides = [1, 1]} : vector<8x128xf32> to vector<8x32xf32>
    %8 = vector.extract_strided_slice %0 {offsets = [0, 64], sizes = [8, 32], strides = [1, 1]} : vector<8x128xf32> to vector<8x32xf32>
    %9 = vector.extract_strided_slice %0 {offsets = [0, 96], sizes = [8, 32], strides = [1, 1]} : vector<8x128xf32> to vector<8x32xf32>
    %10 = vector.extract_strided_slice %0 {offsets = [0, 96], sizes = [8, 32], strides = [1, 1]} : vector<8x128xf32> to vector<8x32xf32>
    %11 = vector.extract_strided_slice %0 {offsets = [0, 0], sizes = [8, 32], strides = [1, 1]} : vector<8x128xf32> to vector<8x32xf32>
    %12 = vector.extract_strided_slice %0 {offsets = [0, 0], sizes = [8, 32], strides = [1, 1]} : vector<8x128xf32> to vector<8x32xf32>
    %13 = tpu.concatenate %5, %6, %7, %8, %9, %10, %11, %12 in 1 : vector<8x32xf32>, vector<8x32xf32>, vector<8x32xf32>, vector<8x32xf32>, vector<8x32xf32>, vector<8x32xf32>, vector<8x32xf32>, vector<8x32xf32> -> vector<8x256xf32>
    %14 = arith.mulf %4, %13 : vector<8x256xf32>
    %cst_6 = arith.constant dense<0.000000e+00> : vector<8x8xf32>
    %15 = tpu.matmul %14, %1, %cst_6 {dimension_numbers = #tpu.dot_dimension_numbers<[1], [0], [0], [1], [0, 0, 1, 1], [], []>, precision = #tpu.contract_precision<fp32>} : vector<8x256xf32>, vector<256x8xf32>, vector<8x8xf32> -> vector<8x8xf32>
    %c0_7 = arith.constant 0 : index
    %c0_8 = arith.constant 0 : index
    %16 = vector.load %arg4[%c0_7, %c0_8] : memref<8x8xf32, #tpu.memory_space<vmem>>, vector<8x8xf32>
    tpu.vector_store %arg4[%c0_7, %c0_8], %15 {strides = array<i32>} : memref<8x8xf32, #tpu.memory_space<vmem>>, vector<8x8xf32>,
    return
  }
  func.func @transform_0(%arg0: i32) -> (i32, i32) {
    %c0_i32 = arith.constant 0 : i32
    %c0_i32_0 = arith.constant 0 : i32
    return %arg0, %c0_i32 : i32, i32
  }
  func.func @transform_1(%arg0: i32) -> (i32, i32, i32) {
    %c0_i32 = arith.constant 0 : i32
    %c0_i32_0 = arith.constant 0 : i32
    %c0_i32_1 = arith.constant 0 : i32
    %c0_i32_2 = arith.constant 0 : i32
    return %c0_i32, %c0_i32_0, %c0_i32_1 : i32, i32, i32
  }
  func.func @transform_2(%arg0: i32) -> (i32, i32) {
    %c0_i32 = arith.constant 0 : i32
    %c0_i32_0 = arith.constant 0 : i32
    %c0_i32_1 = arith.constant 0 : i32
    return %c0_i32, %c0_i32_0 : i32, i32
  }
  func.func @transform_3(%arg0: i32) -> (i32, i32) {
    %c0_i32 = arith.constant 0 : i32
    %c0_i32_0 = arith.constant 0 : i32
    return %arg0, %c0_i32 : i32, i32
  }
}

</mosaic_0001>

<bundles_post_ra>
// kernel: tpu_custom_call.1
= control target key start
LH: loop header
LB: loop body
LE: loop exit
PB: predicated region body
PF: predicated region fallthrough
CT: control target
= control target key end

     0   :  { %v3556_v9 = vmov 0.0   ;;  %s3550_s0 = inlined_call_operand.vmem [shape: f32[8,128], index: 0, kind: input, shape index: {}]   ;;  %s3551_s1 = inlined_call_operand.vmem [shape: f32[1,128,256], index: 1, kind: input, shape index: {}]   ;;  %s3552_s2 = inlined_call_operand.vmem [shape: f32[256,8], index: 2, kind: input, shape index: {}]   ;;  %s3553_s3 = inlined_call_operand.hbm [shape: f32[8,8], index: 3, kind: output, shape index: {}]  }
   0x1   :  { %v49_v0 = vld [vmem:[%s3551_s1 + $0x8] sm:$0xff]  ;;  %v51_v1 = vld [vmem:[%s3551_s1 + $0x18] sm:$0xff]  ;;  %v48_v2 = vld [vmem:[%s3551_s1] sm:$0xff]  ;;  %176 = vmatprep.mubr.f32.mxu0 %v3556_v9 }
   0x2   :  { %v80_v3 = vand.u32 4294901760, %v49_v0  ;;  %v84_v4 = vand.u32 4294901760, %v51_v1  ;;  %v50_v5 = vld [vmem:[%s3551_s1 + $0x10] sm:$0xff]  ;;  %v82_v6 = vand.u32 4294901760, %v48_v2  ;;  %v53_v7 = vld [vmem:[%s3551_s1 + $0x28] sm:$0xff]  ;;  %v55_v8 = vld [vmem:[%s3551_s1 + $0x38] sm:$0xff] }
   0x3   :  { %v86_v10 = vand.u32 4294901760, %v50_v5  ;;  %v88_v11 = vand.u32 4294901760, %v53_v7  ;;  %v92_v12 = vand.u32 4294901760, %v55_v8  ;;  %v52_v13 = vld [vmem:[%s3551_s1 + $0x20] sm:$0xff]  ;;  %v54_v14 = vld [vmem:[%s3551_s1 + $0x30] sm:$0xff]  ;;  %v57_v15 = vld [vmem:[%s3551_s1 + $0x48] sm:$0xff] }
   0x4   :  { %v2519_v16 = vpack.c.bf16 %v84_v4, %v80_v3  ;;  %v59_v17 = vld [vmem:[%s3551_s1 + $0x58] sm:$0xff]  ;;  %v56_v18 = vld [vmem:[%s3551_s1 + $0x40] sm:$0xff]  ;;  %v58_v19 = vld [vmem:[%s3551_s1 + $0x50] sm:$0xff]  ;;  %v90_v23 = vand.u32 4294901760, %v52_v13  ;;  %v94_v24 = vand.u32 4294901760, %v54_v14  ;;  %v96_v25 = vand.u32 4294901760, %v57_v15 }
   0x5   :  { %v2530_v20 = vpack.c.bf16 %v86_v10, %v82_v6  ;;  %v2532_v21 = vpack.c.bf16 %v92_v12, %v88_v11  ;;  %v61_v22 = vld [vmem:[%s3551_s1 + $0x68] sm:$0xff]  ;;  %v100_v26 = vand.u32 4294901760, %v59_v17  ;;  %v98_v27 = vand.u32 4294901760, %v56_v18  ;;  %v63_v29 = vld [vmem:[%s3551_s1 + $0x78] sm:$0xff]  ;;  %v60_v30 = vld [vmem:[%s3551_s1 + $0x60] sm:$0xff] }
   0x6   :  { %3694 = vst [vmem:[#allocation5_spill] sm:$0xff] %v2519_v16  ;;  %2044 = vmatprep.subr.bf16.mxu0 %v2519_v16  ;;  %v102_v28 = vand.u32 4294901760, %v58_v19  ;;  %v2546_v31 = vpack.c.bf16 %v94_v24, %v90_v23  ;;  %v104_v32 = vand.u32 4294901760, %v61_v22  ;;  %v62_v33 = vld [vmem:[%s3551_s1 + $0x70] sm:$0xff]  ;;  %v65_v34 = vld [vmem:[%s3551_s1 + $0x88] sm:$0xff]  ;;  %v67_v35 = vld [vmem:[%s3551_s1 + $0x98] sm:$0xff]  ;;  %v2557_v36 = vsub.f32 %v49_v0, %v80_v3 }
   0x7   :  { %3695 = vst [vmem:[#allocation6_spill] sm:$0xff] %v2530_v20  ;;  %3696 = vst [vmem:[#allocation7_spill] sm:$0xff] %v2532_v21  ;;  %2046 = vmatpush1.bf16.msra.mxu0 %v2530_v20  ;;  %v2559_v37 = vsub.f32 %v51_v1, %v84_v4  ;;  %v2561_v38 = vsub.f32 %v48_v2, %v82_v6  ;;  %v2563_v39 = vpack.c.bf16 %v100_v26, %v96_v25  ;;  %v64_v44 = vld [vmem:[%s3551_s1 + $0x80] sm:$0xff]  ;;  %v66_v49 = vld [vmem:[%s3551_s1 + $0x90] sm:$0xff] }
   0x8   :  { %2048 = vmatprep.subr.bf16.mxu0 %v2532_v21  ;;  %3697 = vst [vmem:[#allocation8_spill] sm:$0xff] %v2546_v31  ;;  %v2565_v40 = vsub.f32 %v50_v5, %v86_v10  ;;  %v2567_v41 = vsub.f32 %v53_v7, %v88_v11  ;;  %v2569_v42 = vpack.c.bf16 %v102_v28, %v98_v27  ;;  %v108_v43 = vand.u32 4294901760, %v63_v29  ;;  %v69_v50 = vld [vmem:[%s3551_s1 + $0xa8] sm:$0xff]  ;;  %v71_v55 = vld [vmem:[%s3551_s1 + $0xb8] sm:$0xff]  ;;  %v68_v56 = vld [vmem:[%s3551_s1 + $0xa0] sm:$0xff] }
   0x9   :  { %3698 = vst [vmem:[#allocation9_spill] sm:$0xff] %v2563_v39  ;;  %v106_v45 = vand.u32 4294901760, %v60_v30  ;;  %v110_v46 = vand.u32 4294901760, %v62_v33  ;;  %v112_v47 = vand.u32 4294901760, %v65_v34  ;;  %v116_v48 = vand.u32 4294901760, %v67_v35 }
   0xa   :  { %3699 = vst [vmem:[#allocation10_spill] sm:$0xff] %v2569_v42  ;;  %v2581_v51 = vsub.f32 %v55_v8, %v92_v12  ;;  %v2583_v52 = vsub.f32 %v52_v13, %v90_v23  ;;  %v2585_v53 = vsub.f32 %v54_v14, %v94_v24  ;;  %v2588_v54 = vpack.c.bf16 %v108_v43, %v104_v32 }
   0xb   :  { %2050 = vmatpush1.bf16.msra.mxu0 %v2546_v31 }
   0xc   :  { %2052 = vmatprep.subr.bf16.mxu0 %v2563_v39  ;;  %3700 = vst [vmem:[#allocation11_spill] sm:$0xff] %v2588_v54 }
   0xd   :  { %8 = vsyncpa [#allocation3], 0  ;;  %v2596_v57 = vsub.f32 %v57_v15, %v96_v25  ;;  %v2598_v58 = vsub.f32 %v59_v17, %v100_v26  ;;  %v2600_v59 = vsub.f32 %v56_v18, %v98_v27  ;;  %v2602_v60 = vsub.f32 %v58_v19, %v102_v28  ;;  %v70_v61 = vld [vmem:[%s3551_s1 + $0xb0] sm:$0xff]  ;;  %v73_v62 = vld [vmem:[%s3551_s1 + $0xc8] sm:$0xff]  ;;  %s2467_s5 = smov 32   ;;  %s2468_s12 = smov 96  }
   0xe   :  { %v75_v63 = vld [vmem:[%s3551_s1 + $0xd8] sm:$0xff]  ;;  %v2613_v0 = vsub.f32 %v61_v22, %v104_v32  ;;  %v2615_v1 = vsub.f32 %v63_v29, %v108_v43  ;;  %v114_v2 = vand.u32 4294901760, %v64_v44  ;;  %v118_v3 = vand.u32 4294901760, %v66_v49  ;;  %v72_v8 = vld [vmem:[%s3551_s1 + $0xc0] sm:$0xff]  ;;  %v74_v10 = vld [vmem:[%s3551_s1 + $0xd0] sm:$0xff]  ;;  %s2469_s20 = smov 64  }
   0xf   :  { %2054 = vmatpush1.bf16.msra.mxu0 %v2569_v42  ;;  %v2618_v4 = vpack.c.bf16 %v110_v46, %v106_v45  ;;  %v2620_v5 = vpack.c.bf16 %v116_v48, %v112_v47  ;;  %v120_v6 = vand.u32 4294901760, %v69_v50  ;;  %v124_v7 = vand.u32 4294901760, %v71_v55  ;;  %v2644_v26 = vld [vmem:[%s3550_s0] sm:$0xff]  ;;  %v77_v43 = vld [vmem:[%s3551_s1 + $0xe8] sm:$0xff] }
  0x10   :  { %2056 = vmatprep.subr.bf16.mxu0 %v2588_v54  ;;  %v122_v11 = vand.u32 4294901760, %v68_v56  ;;  %v126_v12 = vand.u32 4294901760, %v70_v61  ;;  %v128_v13 = vand.u32 4294901760, %v73_v62  ;;  %v132_v14 = vand.u32 4294901760, %v75_v63  ;;  %3704 = vst [vmem:[#allocation15_spill] sm:$0xff] %v2644_v26 }
  0x11   :  { %3701 = vst [vmem:[#allocation12_spill] sm:$0xff] %v2618_v4  ;;  %3702 = vst [vmem:[#allocation13_spill] sm:$0xff] %v2620_v5  ;;  %v2629_v15 = vsub.f32 %v60_v30, %v106_v45  ;;  %v2631_v17 = vsub.f32 %v62_v33, %v110_v46  ;;  %v2633_v18 = vsub.f32 %v65_v34, %v112_v47  ;;  %v130_v24 = vand.u32 4294901760, %v72_v8  ;;  %v79_v45 = vld [vmem:[%s3551_s1 + $0xf8] sm:$0xff] }
  0x12   :  { %v2635_v19 = vsub.f32 %v67_v35, %v116_v48  ;;  %v2637_v22 = vpack.c.bf16 %v118_v3, %v114_v2  ;;  %v2639_v23 = vsub.f32 %v64_v44, %v114_v2  ;;  %v134_v25 = vand.u32 4294901760, %v74_v10 }
  0x13   :  { %2058 = vmatpush1.bf16.msra.mxu0 %v2618_v4  ;;  %v2647_v27 = vsub.f32 %v66_v49, %v118_v3  ;;  %v2649_v28 = vpack.c.bf16 %v124_v7, %v120_v6  ;;  %v2651_v29 = vsub.f32 %v69_v50, %v120_v6  ;;  %v2653_v30 = vsub.f32 %v71_v55, %v124_v7 }
  0x14   :  { %3703 = vst [vmem:[#allocation14_spill] sm:$0xff] %v2637_v22  ;;  %2060 = vmatprep.subr.bf16.mxu0 %v2620_v5  ;;  %v2656_v32 = vpack.c.bf16 %v126_v12, %v122_v11  ;;  %v2658_v33 = vsub.f32 %v68_v56, %v122_v11  ;;  %v2660_v34 = vsub.f32 %v70_v61, %v126_v12  ;;  %v3555_v46 = vand.u32 4294901760, %v2557_v36  ;;  %v76_v56 = vld [vmem:[%s3551_s1 + $0xe0] sm:$0xff]  ;;  %v2689_v61 = vld [vmem:[%s3551_s1 + $0xf0] sm:$0xff] }
  0x15   :  { %3705 = vst [vmem:[#allocation16_spill] sm:$0xff] %v2649_v28  ;;  %v2662_v35 = vpack.c.bf16 %v132_v14, %v128_v13  ;;  %v2667_v44 = vsub.f32 %v73_v62, %v128_v13  ;;  %v3554_v47 = vand.u32 4294901760, %v2559_v37  ;;  %v2675_v48 = vand.u32 4294901760, %v2644_v26 }
  0x16   :  { %3706 = vst [vmem:[#allocation17_spill] sm:$0xff] %v2656_v32  ;;  %v2677_v49 = vsub.f32 %v75_v63, %v132_v14  ;;  %v2679_v50 = vpack.c.bf16 %v134_v25, %v130_v24  ;;  %v2681_v55 = vsub.f32 %v72_v8, %v130_v24  ;;  %v3558_v62 = vand.u32 4294901760, %v2561_v38 }
  0x17   :  { %3707 = vst [vmem:[#allocation18_spill] sm:$0xff] %v2662_v35  ;;  %2062 = vmatpush1.bf16.msra.mxu0 %v2637_v22  ;;  %v2693_v2 = vsub.f32 %v74_v10, %v134_v25  ;;  %v136_v63 = vand.u32 4294901760, %v77_v43  ;;  %v191_v3 = vsub.f32 %v2557_v36, %v3555_v46  ;;  %v203_v6 = vsub.f32 %v2559_v37, %v3554_v47 }
  0x18   :  { %3708 = vst [vmem:[#allocation19_spill] sm:$0xff] %v2677_v49  ;;  %3709 = vst [vmem:[#allocation20_spill] sm:$0xff] %v2679_v50  ;;  %2064 = vmatprep.subr.bf16.mxu0 %v2649_v28  ;;  %v140_v7 = vand.u32 4294901760, %v79_v45  ;;  %v2704_v8 = vsub.f32 %v2644_v26, %v2675_v48  ;;  %v3561_v11 = vand.u32 4294901760, %v2565_v40  ;;  %v138_v12 = vand.u32 4294901760, %v76_v56 }
  0x19   :  { %3710 = vst [vmem:[#allocation21_spill] sm:$0xff] %v2681_v55  ;;  %3711 = vst [vmem:[#allocation22_spill] sm:$0xff] %v2693_v2  ;;  %v192_v25 = vand.u32 4294901760, %v191_v3  ;;  %v204_v47 = vand.u32 4294901760, %v203_v6  ;;  %v197_v9 = vsub.f32 %v2561_v38, %v3558_v62  ;;  %v3713_v13 = vand.u32 4294901760, %v2567_v41 }
  0x1a   :  { %3712 = vst [vmem:[#allocation23_spill] sm:$0xff] %v2704_v8  ;;  %v209_v10 = vsub.f32 %v2565_v40, %v3561_v11  ;;  %v3714_v24 = vand.u32 4294901760, %v2581_v51  ;;  %v3574_v6 = vand.u32 4294901760, %v2585_v53  ;;  %v2727_v46 = vpack.c.bf16 %v140_v7, %v136_v63 }
  0x1b   :  { %2066 = vmatpush1.bf16.msra.mxu0 %v2656_v32  ;;  %v215_v14 = vsub.f32 %v2567_v41, %v3713_v13  ;;  %v2729_v62 = vsub.f32 %v77_v43, %v136_v63  ;;  %v2731_v32 = vsub.f32 %v79_v45, %v140_v7  ;;  %v3716_v28 = vand.u32 4294901760, %v2689_v61 }
  0x1c   :  { %v227_v3 = vsub.f32 %v2581_v51, %v3714_v24  ;;  %2068 = vmatprep.subr.bf16.mxu0 %v2662_v35  ;;  %3715 = vst [vmem:[#allocation24_spill] sm:$0xff] %v2727_v46  ;;  %v3718_v13 = vand.u32 4294901760, %v2583_v52  ;;  %v233_v35 = vsub.f32 %v2585_v53, %v3574_v6  ;;  %v3579_v5 = vand.u32 4294901760, %v2598_v58 }
  0x1d   :  { %v2736_v22 = vpack.c.bf16 %v3716_v28, %v138_v12  ;;  %v2075_v43 = vpack.c.bf16 %v204_v47, %v192_v25  ;;  %v3719_v45 = vand.u32 4294901760, %v2704_v8  ;;  %v198_v7 = vand.u32 4294901760, %v197_v9 }
  0x1e   :  { %v221_v24 = vsub.f32 %v2583_v52, %v3718_v13  ;;  %v210_v28 = vand.u32 4294901760, %v209_v10  ;;  %v216_v4 = vand.u32 4294901760, %v215_v14  ;;  %v228_v54 = vand.u32 4294901760, %v227_v3 }
  0x1f   :  { %3717 = vst [vmem:[#allocation25_spill] sm:$0xff] %v2736_v22  ;;  %v180_v63 = vsub.f32 %v2704_v8, %v3719_v45  ;;  %2070 = vmatpush1.bf16.msra.mxu0 %v2679_v50  ;;  %v3582_v13 = vand.u32 4294901760, %v2602_v60  ;;  %v3720_v6 = vand.u32 4294901760, %v2596_v57  ;;  %v251_v25 = vsub.f32 %v2598_v58, %v3579_v5 }
  0x20   :  { %2072 = vmatprep.subr.bf16.mxu0 %v2727_v46  ;;  %v3587_v9 = vand.u32 4294901760, %v2613_v0  ;;  %v3592_v45 = vand.u32 4294901760, %v2615_v1  ;;  %v222_v11 = vand.u32 4294901760, %v221_v24  ;;  %v234_v10 = vand.u32 4294901760, %v233_v35 }
  0x21   :  { %v239_v47 = vsub.f32 %v2596_v57, %v3720_v6  ;;  %v3721_v14 = vand.u32 4294901760, %v2600_v59  ;;  %v257_v46 = vsub.f32 %v2602_v60, %v3582_v13  ;;  %v181_v50 = vand.u32 4294901760, %v180_v63 }
  0x22   :  { %v263_v6 = vsub.f32 %v2613_v0, %v3587_v9  ;;  %v275_v5 = vsub.f32 %v2615_v1, %v3592_v45  ;;  %v2774_v35 = vsub.f32 %v76_v56, %v138_v12  ;;  %v3603_v42 = vand.u32 4294901760, %v2631_v17 }
  0x23   :  { %v245_v3 = vsub.f32 %v2600_v59, %v3721_v14  ;;  %2074 = vmatpush1.bf16.msra.mxu0 %v2736_v22  ;;  %v2077_v14 = vpack.c.bf16 %v210_v28, %v198_v7  ;;  %v3597_v13 = vand.u32 4294901760, %v2633_v18  ;;  %v2079_v63 = vpack.c.bf16 %v228_v54, %v216_v4 }
  0x24   :  { %2076 = vmatprep.subr.bf16.mxu0 %v2075_v43  ;;  %v240_v39 = vand.u32 4294901760, %v239_v47  ;;  %v252_v31 = vand.u32 4294901760, %v251_v25  ;;  %v3596_v9 = vand.u32 4294901760, %v2635_v19  ;;  %v2081_v21 = vpack.c.bf16 %v234_v10, %v222_v11 }
  0x25   :  { %v246_v20 = vand.u32 4294901760, %v245_v3  ;;  %v258_v45 = vand.u32 4294901760, %v257_v46  ;;  %v3595_v24 = vand.u32 4294901760, %v2639_v23  ;;  %v264_v22 = vand.u32 4294901760, %v263_v6 }
  0x26   :  { %182 = vmatmul.mubr.f32.vlgmr.msra.gmra.mrb[0].mxu0 %v181_v50  ;;  %v276_v56 = vand.u32 4294901760, %v275_v5  ;;  %v3722_v12 = vand.u32 4294901760, %v2629_v15  ;;  %v3598_v28 = vand.u32 4294901760, %v2647_v27  ;;  %v281_v54 = vsub.f32 %v2631_v17, %v3603_v42 }
  0x27   :  { %2078 = vmatpush1.bf16.msra.mxu0 %v2077_v14  ;;  %v287_v4 = vsub.f32 %v2633_v18, %v3597_v13  ;;  %v299_v46 = vsub.f32 %v2635_v19, %v3596_v9  ;;  %v3723_v5 = vmov 0.0   ;;  %v2083_v50 = vpack.c.bf16 %v252_v31, %v240_v39 }
  0x28   :  { %v269_v7 = vsub.f32 %v2629_v15, %v3722_v12  ;;  %412 = vmatprep.mubr.f32.mxu0 %v3723_v5  ;;  %2080 = vmatprep.subr.bf16.mxu0 %v2079_v63  ;;  %v293_v11 = vsub.f32 %v2639_v23, %v3595_v24  ;;  %v3602_v43 = vand.u32 4294901760, %v2651_v29  ;;  %v3601_v47 = vand.u32 4294901760, %v2653_v30 }
  0x29   :  { %v3724_v25 = vand.u32 4294901760, %v2689_v61  ;;  %v305_v3 = vsub.f32 %v2647_v27, %v3598_v28  ;;  %v3599_v6 = vand.u32 4294901760, %v2658_v33  ;;  %v3600_v31 = vand.u32 4294901760, %v2660_v34 }
  0x2a   :  { %v2085_v39 = vpack.c.bf16 %v258_v45, %v246_v20  ;;  %v2087_v14 = vpack.c.bf16 %v276_v56, %v264_v22  ;;  %v270_v63 = vand.u32 4294901760, %v269_v7  ;;  %v3606_v12 = vand.u32 4294901760, %v2667_v44 }
  0x2b   :  { %v2802_v10 = vsub.f32 %v2689_v61, %v3724_v25  ;;  %2082 = vmatpush1.bf16.msra.mxu0 %v2081_v21  ;;  %v282_v24 = vand.u32 4294901760, %v281_v54  ;;  %v288_v9 = vand.u32 4294901760, %v287_v4  ;;  %v300_v13 = vand.u32 4294901760, %v299_v46 }
  0x2c   :  { %v346_v61 = vand.u32 4294901760, %v2677_v49  ;;  %2084 = vmatprep.subr.bf16.mxu0 %v2083_v50  ;;  %v294_v25 = vand.u32 4294901760, %v293_v11  ;;  %v311_v28 = vsub.f32 %v2651_v29, %v3602_v43  ;;  %v323_v20 = vsub.f32 %v2653_v30, %v3601_v47 }
  0x2d   :  { %v340_v22 = vand.u32 4294901760, %v2681_v55  ;;  %v306_v45 = vand.u32 4294901760, %v305_v3  ;;  %v317_v21 = vsub.f32 %v2658_v33, %v3599_v6  ;;  %v329_v56 = vsub.f32 %v2660_v34, %v3600_v31 }
  0x2e   :  { %v352_v7 = vand.u32 4294901760, %v2693_v2  ;;  %v335_v54 = vsub.f32 %v2667_v44, %v3606_v12  ;;  %v347_v4 = vsub.f32 %v2677_v49, %v346_v61  ;;  %v358_v46 = vand.u32 4294901760, %v2729_v62 }
  0x2f   :  { %v370_v50 = vand.u32 4294901760, %v2731_v32  ;;  %2086 = vmatpush1.bf16.msra.mxu0 %v2085_v39  ;;  %v2089_v11 = vpack.c.bf16 %v282_v24, %v270_v63  ;;  %v341_v3 = vsub.f32 %v2681_v55, %v340_v22  ;;  %v364_v31 = vand.u32 4294901760, %v2774_v35 }
  0x30   :  { %v353_v6 = vsub.f32 %v2693_v2, %v352_v7  ;;  %2088 = vmatprep.subr.bf16.mxu0 %v2087_v14  ;;  %v2091_v47 = vpack.c.bf16 %v300_v13, %v288_v9  ;;  %v312_v43 = vand.u32 4294901760, %v311_v28  ;;  %v324_v42 = vand.u32 4294901760, %v323_v20 }
  0x31   :  { %v2093_v8 = vpack.c.bf16 %v306_v45, %v294_v25  ;;  %v318_v12 = vand.u32 4294901760, %v317_v21  ;;  %v330_v16 = vand.u32 4294901760, %v329_v56  ;;  %v336_v49 = vand.u32 4294901760, %v335_v54 }
  0x32   :  { %v348_v26 = vand.u32 4294901760, %v347_v4  ;;  %v359_v5 = vsub.f32 %v2729_v62, %v358_v46  ;;  %v371_v39 = vsub.f32 %v2731_v32, %v370_v50  ;;  %v342_v24 = vand.u32 4294901760, %v341_v3 }
  0x33   :  { %2090 = vmatpush1.bf16.msra.mxu0 %v2089_v11  ;;  %v354_v63 = vand.u32 4294901760, %v353_v6  ;;  %v365_v2 = vsub.f32 %v2774_v35, %v364_v31  ;;  %v376_v55 = vand.u32 4294901760, %v2802_v10  ;;  %v2095_v13 = vpack.c.bf16 %v324_v42, %v312_v43 }
  0x34   :  { %2092 = vmatprep.subr.bf16.mxu0 %v2091_v47  ;;  %v2097_v9 = vpack.c.bf16 %v330_v16, %v318_v12  ;;  %v2099_v28 = vpack.c.bf16 %v348_v26, %v336_v49  ;;  %v360_v14 = vand.u32 4294901760, %v359_v5  ;;  %v372_v25 = vand.u32 4294901760, %v371_v39 }
  0x35   :  { %v2101_v20 = vpack.c.bf16 %v354_v63, %v342_v24  ;;  %v366_v45 = vand.u32 4294901760, %v365_v2  ;;  %v377_v21 = vsub.f32 %v2802_v10, %v376_v55  ;;  %v3725_v56 = vand.u32 4294901760, %v2557_v36 }
  0x36   :  { %v3726_v54 = vand.u32 4294901760, %v2559_v37  ;;  %v3727_v4 = vand.u32 4294901760, %v2561_v38  ;;  %v3728_v42 = vand.u32 4294901760, %v2565_v40  ;;  %v3729_v26 = vand.u32 4294901760, %v2567_v41 }
  0x37   :  { %2094 = vmatpush1.bf16.msra.mxu0 %v2093_v8  ;;  %v3730_v49 = vand.u32 4294901760, %v2581_v51  ;;  %v3731_v8 = vand.u32 4294901760, %v2583_v52  ;;  %v3732_v5 = vand.u32 4294901760, %v2585_v53  ;;  %v3733_v47 = vand.u32 4294901760, %v2596_v57 }
  0x38   :  { %v2843_v6 = vpack.c.bf16 %v3726_v54, %v3725_v56  ;;  %2096 = vmatprep.subr.bf16.mxu0 %v2095_v13  ;;  %v2849_v16 = vpack.c.bf16 %v3728_v42, %v3727_v4  ;;  %v3734_v12 = vand.u32 4294901760, %v2598_v58  ;;  %v3735_v3 = vand.u32 4294901760, %v2600_v59 }
  0x39   :  { %v2855_v2 = vpack.c.bf16 %v3730_v49, %v3729_v26  ;;  %v2861_v43 = vpack.c.bf16 %v3732_v5, %v3731_v8  ;;  %v3736_v39 = vand.u32 4294901760, %v2602_v60  ;;  %v3737_v63 = vand.u32 4294901760, %v2613_v0 }
  0x3a   :  { %v2867_v11 = vpack.c.bf16 %v3734_v12, %v3733_v47  ;;  %v3738_v13 = vand.u32 4294901760, %v2615_v1  ;;  %v3739_v54 = vand.u32 4294901760, %v2629_v15  ;;  %v3740_v4 = vand.u32 4294901760, %v2631_v17 }
  0x3b   :  { %v2873_v24 = vpack.c.bf16 %v3736_v39, %v3735_v3  ;;  %v3741_v26 = vand.u32 4294901760, %v2633_v18  ;;  %v3742_v49 = vand.u32 4294901760, %v2635_v19  ;;  %v3744_v5 = vand.u32 4294901760, %v2639_v23  ;;  %2098 = vmatpush1.bf16.msra.mxu0 %v2097_v9 }
  0x3c   :  { %v2879_v56 = vpack.c.bf16 %v3738_v13, %v3737_v63  ;;  %v2885_v42 = vpack.c.bf16 %v3740_v4, %v3739_v54  ;;  %v3745_v47 = vand.u32 4294901760, %v2647_v27  ;;  %v3747_v3 = vand.u32 4294901760, %v2651_v29  ;;  %2100 = vmatprep.subr.bf16.mxu0 %v2099_v28  ;;  %v18_v28 = vld [vmem:[%s3552_s2 + $0x10] sm:$0xff] }
  0x3d   :  { %v2891_v8 = vpack.c.bf16 %v3742_v49, %v3741_v26  ;;  %v3748_v39 = vand.u32 4294901760, %v2653_v30  ;;  %v3749_v13 = vand.u32 4294901760, %v2658_v33  ;;  %v3750_v54 = vand.u32 4294901760, %v2660_v34 }
  0x3e   :  { %v2897_v12 = vpack.c.bf16 %v3745_v47, %v3744_v5  ;;  %v3751_v26 = vand.u32 4294901760, %v2667_v44  ;;  %v2915_v5 = vpack.c.bf16 %v352_v7, %v340_v22  ;;  %v2917_v47 = vpack.c.bf16 %v370_v50, %v358_v46  ;;  %v35_v50 = vld [vmem:[%s3552_s2 + $0x98] sm:$0xff] }
  0x3f   :  { %3743 = vst [vmem:[#allocation26_spill] sm:$0xff] %v2891_v8  ;;  %v2903_v63 = vpack.c.bf16 %v3748_v39, %v3747_v3  ;;  %v2909_v4 = vpack.c.bf16 %v3750_v54, %v3749_v13  ;;  %v378_v8 = vand.u32 4294901760, %v377_v21  ;;  %v2103_v3 = vpack.c.bf16 %v372_v25, %v360_v14  ;;  %2102 = vmatpush1.bf16.msra.mxu0 %v2101_v20  ;;  %v37_v21 = vld [vmem:[%s3552_s2 + $0xa8] sm:$0xff] }
  0x40   :  { %3746 = vst [vmem:[#allocation27_spill] sm:$0xff] %v2897_v12  ;;  %v2913_v49 = vpack.c.bf16 %v346_v61, %v3751_v26  ;;  %v2919_v12 = vpack.c.bf16 %v376_v55, %v364_v31  ;;  %v2107_v13 = vpack.c.bf16 %v2559_v37, %v2557_v36  ;;  %v2109_v61 = vpack.c.bf16 %v2565_v40, %v2561_v38  ;;  %v32_v36 = vld [vmem:[%s3552_s2 + $0x80] sm:$0xff]  ;;  %v33_v37 = vld [vmem:[%s3552_s2 + $0x88] sm:$0xff] }
  0x41   :  { %v2105_v39 = vpack.c.bf16 %v378_v8, %v366_v45  ;;  %2104 = vmatprep.subr.bf16.mxu0 %v2103_v3  ;;  %v2111_v22 = vpack.c.bf16 %v2581_v51, %v2567_v41  ;;  %v2113_v55 = vpack.c.bf16 %v2585_v53, %v2583_v52  ;;  %v2115_v31 = vpack.c.bf16 %v2598_v58, %v2596_v57  ;;  %v16_v38 = vld [vmem:[%s3552_s2] sm:$0xff]  ;;  %v17_v53 = vld [vmem:[%s3552_s2 + $0x8] sm:$0xff]  ;;  %v34_v58 = vld [vmem:[%s3552_s2 + $0x90] sm:$0xff] }
  0x42   :  { %v2117_v40 = vpack.c.bf16 %v2602_v60, %v2600_v59  ;;  %v3752_v41 = vmov 0.0   ;;  %v1004_v51 = vand.u32 4294901760, %v32_v36  ;;  %v1007_v52 = vand.u32 4294901760, %v33_v37  ;;  %v3753_v60 = vld [vmem:[#allocation15_spill] sm:$0xff]  ;;  %v36_v45 = vld [vmem:[%s3552_s2 + $0xa0] sm:$0xff] }
  0x43   :  { %2106 = vmatpush1.bf16.msra.mxu0 %v2105_v39  ;;  %v956_v57 = vand.u32 4294901760, %v16_v38  ;;  %v2119_v7 = vpack.c.bf16 %v2615_v1, %v2613_v0  ;;  %939 = vrot.lane.b32.xlu0 %v3753_v60, %s2467_s5  ;;  %v959_v46 = vand.u32 4294901760, %v17_v53  ;;  %v1010_v9 = vand.u32 4294901760, %v34_v58  ;;  %v19_v0 = vld [vmem:[%s3552_s2 + $0x18] sm:$0xff]  ;;  %v20_v8 = vld [vmem:[%s3552_s2 + $0x20] sm:$0xff] }
  0x44   :  { %2108 = vmatprep.subr.bf16.mxu0 %v2107_v13  ;;  %936 = vrot.lane.b32.xlu1 %v3753_v60, %s2468_s12  ;;  %v2965_v1 = vpack.c.bf16 %v1007_v52, %v1004_v51  ;;  %v2967_v14 = vsub.f32 %v32_v36, %v1004_v51  ;;  %v2969_v25 = vsub.f32 %v33_v37, %v1007_v52  ;;  %v1013_v3 = vand.u32 4294901760, %v35_v50  ;;  %v21_v13 = vld [vmem:[%s3552_s2 + $0x28] sm:$0xff] }
  0x45   :  { %v2971_v20 = vsub.f32 %v16_v38, %v956_v57  ;;  %v2982_v54 = vpack.c.bf16 %v959_v46, %v956_v57  ;;  %v2984_v26 = vsub.f32 %v17_v53, %v959_v46  ;;  %v2986_v39 = vsub.f32 %v34_v58, %v1010_v9  ;;  %v39_v57 = vld [vmem:[%s3552_s2 + $0xb8] sm:$0xff] }
  0x46   :  { %414 = vmatmul.mubr.f32.vlgmr.msra.gmra.mrb[0].mxu0 %v2675_v48  ;;  %3754 = vst [vmem:[#allocation15_spill] sm:$0xff] %v2965_v1  ;;  %2236 = vmatprep.subr.bf16.mxu1 %v2965_v1  ;;  %v1016_v36 = vand.u32 4294901760, %v36_v45  ;;  %v1019_v37 = vand.u32 4294901760, %v37_v21  ;;  %v2993_v38 = vpack.c.bf16 %v1013_v3, %v1010_v9  ;;  %v2995_v51 = vsub.f32 %v35_v50, %v1013_v3  ;;  %v23_v9 = vld [vmem:[%s3552_s2 + $0x38] sm:$0xff]  ;;  %v40_v3 = vld [vmem:[%s3552_s2 + $0xc0] sm:$0xff] }
  0x47   :  { %2110 = vmatpush1.bf16.msra.mxu0 %v2109_v61  ;;  %548 = vmatprep.mubr.f32.mxu0 %v3752_v41  ;;  %3755 = vst [vmem:[#allocation28_spill] sm:$0xff] %v2982_v54  ;;  %v962_v61 = vand.u32 4294901760, %v18_v28  ;;  %v968_v52 = vand.u32 4294901760, %v20_v8  ;;  %v971_v53 = vand.u32 4294901760, %v21_v13  ;;  %v2123_v58 = vpack.c.bf16 %v2635_v19, %v2633_v18  ;;  %v41_v18 = vld [vmem:[%s3552_s2 + $0xc8] sm:$0xff] }
  0x48   :  { %2112 = vmatprep.subr.bf16.mxu0 %v2111_v22  ;;  %v965_v22 = vand.u32 4294901760, %v19_v0  ;;  %942 = vrot.lane.b32.xlu0 %v3753_v60, %s2469_s20  ;;  %3756 = vst [vmem:[#allocation29_spill] sm:$0xff] %v2993_v38  ;;  %v3025_v19 = vpack.c.bf16 %v1019_v37, %v1016_v36  ;;  %v1025_v1 = vand.u32 4294901760, %v39_v57  ;;  %vm945_vm0 = vcmask 261120  }
  0x49   :  { %2238 = vmatpush3.bf16.msra.mxu1 %v2982_v54  ;;  %v3011_v46 = vsub.f32 %v18_v28, %v962_v61  ;;  %v3027_v28 = vsub.f32 %v36_v45, %v1016_v36  ;;  %v3036_v59 = vsub.f32 %v21_v13, %v971_v53  ;;  %v1028_v45 = vand.u32 4294901760, %v40_v3 }
  0x4a   :  { %v3009_v60 = vpack.c.bf16 %v965_v22, %v962_v61  ;;  %v3013_v50 = vsub.f32 %v19_v0, %v965_v22  ;;  %2240 = vmatprep.subr.bf16.mxu1 %v2993_v38  ;;  %v3029_v0 = vsub.f32 %v37_v21, %v1019_v37  ;;  %v3031_v61 = vsub.f32 %v20_v8, %v968_v52  ;;  %v24_v22 = vld [vmem:[%s3552_s2 + $0x40] sm:$0xff]  ;;  %v25_v21 = vld [vmem:[%s3552_s2 + $0x48] sm:$0xff] }
  0x4b   :  { %2114 = vmatpush1.bf16.msra.mxu0 %v2113_v55  ;;  %v38_v55 = vld [vmem:[%s3552_s2 + $0xb0] sm:$0xff]  ;;  %3758 = vst [vmem:[#allocation31_spill] sm:$0xff] %v3011_v46  ;;  %3760 = vst [vmem:[#allocation33_spill] sm:$0xff] %v3036_v59  ;;  %v3038_v38 = vpack.c.bf16 %v971_v53, %v968_v52  ;;  %v977_v46 = vand.u32 4294901760, %v23_v9  ;;  %v1031_v36 = vand.u32 4294901760, %v41_v18  ;;  %v980_v37 = vand.u32 4294901760, %v24_v22 }
  0x4c   :  { %2116 = vmatprep.subr.bf16.mxu0 %v2115_v31  ;;  %v22_v31 = vld [vmem:[%s3552_s2 + $0x30] sm:$0xff]  ;;  %3757 = vst [vmem:[#allocation30_spill] sm:$0xff] %v3009_v60  ;;  %3759 = vst [vmem:[#allocation32_spill] sm:$0xff] %v3013_v50  ;;  %v1022_v54 = vand.u32 4294901760, %v38_v55  ;;  %v3055_v53 = vsub.f32 %v40_v3, %v1028_v45  ;;  %v3765_v59 = vpack.c.bf16 %v2631_v17, %v2629_v15  ;;  %v3778_v3 = vld [vmem:[#allocation7_spill] sm:$0xff]  ;;  %vm946_vm1 = vcmask 523264  }
  0x4d   :  { %v974_v50 = vand.u32 4294901760, %v22_v31  ;;  %2242 = vmatpush3.bf16.msra.mxu1 %v3009_v60  ;;  %v3053_v52 = vsub.f32 %v23_v9, %v977_v46  ;;  %v3064_v60 = vsub.f32 %v24_v22, %v980_v37  ;;  %v3074_v15 = vpack.c.bf16 %v1031_v36, %v1028_v45  ;;  %v3782_v22 = vld [vmem:[#allocation11_spill] sm:$0xff]  ;;  %v3785_v45 = vld [vmem:[#allocation14_spill] sm:$0xff] }
  0x4e   :  { %v3044_v8 = vsub.f32 %v38_v55, %v1022_v54  ;;  %2244 = vmatprep.subr.bf16.mxu1 %v3025_v19  ;;  %3764 = vst [vmem:[#allocation37_spill] sm:$0xff] %v3055_v53  ;;  %v2125_v55 = vpack.c.bf16 %v2647_v27, %v2639_v23  ;;  %v2129_v17 = vpack.c.bf16 %v2660_v34, %v2658_v33  ;;  %v3771_v23 = vld [vmem:[#allocation19_spill] sm:$0xff]  ;;  %v3775_v34 = vld [vmem:[#allocation5_spill] sm:$0xff]  ;;  %vm948_vm2 = vcmask 785408  }
  0x4f   :  { %2118 = vmatpush1.bf16.msra.mxu0 %v2117_v40  ;;  %v3046_v40 = vsub.f32 %v39_v57, %v1025_v1  ;;  %v3048_v13 = vsub.f32 %v22_v31, %v974_v50  ;;  %3763 = vst [vmem:[#allocation36_spill] sm:$0xff] %v3053_v52  ;;  %v3062_v57 = vsub.f32 %v41_v18, %v1031_v36  ;;  %v983_v31 = vand.u32 4294901760, %v25_v21  ;;  %v3779_v18 = vld [vmem:[#allocation8_spill] sm:$0xff] }
  0x50   :  { %2120 = vmatprep.subr.bf16.mxu0 %v2119_v7  ;;  %v3051_v7 = vpack.c.bf16 %v1025_v1, %v1022_v54  ;;  %3767 = vst [vmem:[#allocation39_spill] sm:$0xff] %v3064_v60  ;;  %v2127_v1 = vpack.c.bf16 %v2653_v30, %v2651_v29  ;;  %v3069_v54 = vpack.c.bf16 %v977_v46, %v974_v50  ;;  %3770 = vst [vmem:[#allocation42_spill] sm:$0xff] %v3074_v15  ;;  %v3773_v30 = vld [vmem:[#allocation21_spill] sm:$0xff]  ;;  %v3777_v50 = vld [vmem:[#allocation6_spill] sm:$0xff]  ;;  %vm1817_vm3 = vcmask 64512  }
  0x51   :  { %3761 = vst [vmem:[#allocation34_spill] sm:$0xff] %v3046_v40  ;;  %3762 = vst [vmem:[#allocation35_spill] sm:$0xff] %v3048_v13  ;;  %2246 = vmatpush3.bf16.msra.mxu1 %v3038_v38  ;;  %v3071_v9 = vsub.f32 %v25_v21, %v983_v31  ;;  %v2131_v27 = vpack.c.bf16 %v3771_v23, %v2667_v44  ;;  %v3081_v29 = vpack.c.bf16 %v983_v31, %v980_v37  ;;  %v3776_v44 = vld [vmem:[#allocation23_spill] sm:$0xff]  ;;  %v3786_v36 = vld [vmem:[#allocation16_spill] sm:$0xff] }
  0x52   :  { %3766 = vst [vmem:[#allocation38_spill] sm:$0xff] %v3062_v57  ;;  %3768 = vst [vmem:[#allocation40_spill] sm:$0xff] %v3069_v54  ;;  %2248 = vmatprep.subr.bf16.mxu1 %v3051_v7  ;;  %v2135_v46 = vpack.c.bf16 %v2731_v32, %v2729_v62  ;;  %v2137_v33 = vpack.c.bf16 %v2802_v10, %v2774_v35  ;;  %v3780_v32 = vld [vmem:[#allocation9_spill] sm:$0xff]  ;;  %v3781_v62 = vld [vmem:[#allocation10_spill] sm:$0xff] }
  0x53   :  { %2122 = vmatpush1.bf16.msra.mxu0 %v3765_v59  ;;  %3769 = vst [vmem:[#allocation41_spill] sm:$0xff] %v3071_v9  ;;  %3772 = vst [vmem:[#allocation19_spill] sm:$0xff] %v3081_v29  ;;  %v3774_v59 = vld [vmem:[#allocation22_spill] sm:$0xff]  ;;  %v3783_v35 = vld [vmem:[#allocation12_spill] sm:$0xff] }
  0x54   :  { %2124 = vmatprep.subr.bf16.mxu0 %v2123_v58  ;;  %v2133_v58 = vpack.c.bf16 %v3774_v59, %v3773_v30  ;;  %v3784_v10 = vld [vmem:[#allocation13_spill] sm:$0xff]  ;;  %v3788_v37 = vld [vmem:[#allocation18_spill] sm:$0xff]  ;;  %v3790_v31 = vld [vmem:[#allocation24_spill] sm:$0xff] }
  0x55   :  { %2250 = vmatpush3.bf16.msra.mxu1 %v3069_v54  ;;  %v3787_v21 = vld [vmem:[#allocation17_spill] sm:$0xff]  ;;  %v3794_v23 = vld [vmem:[#allocation27_spill] sm:$0xff] }
  0x56   :  { %2252 = vmatprep.subr.bf16.mxu1 %v3074_v15 }
  0x57   :  { %2126 = vmatpush1.bf16.msra.mxu0 %v2125_v55  ;;  %v3789_v55 = vld [vmem:[#allocation20_spill] sm:$0xff] }
  0x58   :  { %2128 = vmatprep.subr.bf16.mxu0 %v2127_v1  ;;  %v3791_v1 = vld [vmem:[#allocation25_spill] sm:$0xff] }
  0x59   :  { %2254 = vmatpush3.bf16.msra.mxu1 %v3081_v29 }
  0x5b   :  { %2130 = vmatpush1.bf16.msra.mxu0 %v2129_v17  ;;  %v3792_v17 = vand.u32 4294901760, %v3776_v44 }
  0x5c   :  { %2132 = vmatprep.subr.bf16.mxu0 %v2131_v27  ;;  %v29_v27 = vld [vmem:[%s3552_s2 + $0x68] sm:$0xff] }
  0x5d   :  { %v995_v59 = vand.u32 4294901760, %v29_v27 }
  0x5f   :  { %2134 = vmatpush1.bf16.msra.mxu0 %v2133_v58 }
  0x60   :  { %2136 = vmatprep.subr.bf16.mxu0 %v2135_v46 }
  0x63   :  { %2138 = vmatpush1.bf16.msra.mxu0 %v2137_v33  ;;  %v46_v33 = vld [vmem:[%s3552_s2 + $0xf0] sm:$0xff] }
  0x64   :  { %2140 = vmatprep.subr.bf16.mxu0 %v3775_v34 }
  0x66   :  { %551 = vmatmul.mubr.f32.vlgmr.msra.gmra.mrb[0].mxu0 %v3776_v44 }
  0x67   :  { %2142 = vmatpush1.bf16.msra.mxu0 %v3777_v50  ;;  %653 = vmatprep.mubr.f32.mxu0 %v3752_v41 }
  0x68   :  { %2144 = vmatprep.subr.bf16.mxu0 %v3778_v3 }
  0x6b   :  { %2146 = vmatpush1.bf16.msra.mxu0 %v3779_v18 }
  0x6c   :  { %2148 = vmatprep.subr.bf16.mxu0 %v3780_v32 }
  0x6f   :  { %2150 = vmatpush1.bf16.msra.mxu0 %v3781_v62 }
  0x70   :  { %2152 = vmatprep.subr.bf16.mxu0 %v3782_v22 }
  0x73   :  { %2154 = vmatpush1.bf16.msra.mxu0 %v3783_v35 }
  0x74   :  { %2156 = vmatprep.subr.bf16.mxu0 %v3784_v10 }
  0x77   :  { %2158 = vmatpush1.bf16.msra.mxu0 %v3785_v45 }
  0x78   :  { %2160 = vmatprep.subr.bf16.mxu0 %v3786_v36 }
  0x7b   :  { %2162 = vmatpush1.bf16.msra.mxu0 %v3787_v21 }
  0x7c   :  { %2164 = vmatprep.subr.bf16.mxu0 %v3788_v37 }
  0x7f   :  { %2166 = vmatpush1.bf16.msra.mxu0 %v3789_v55 }
  0x80   :  { %2168 = vmatprep.subr.bf16.mxu0 %v3790_v31 }
  0x83   :  { %2170 = vmatpush1.bf16.msra.mxu0 %v3791_v1 }
  0x84   :  { %2172 = vmatprep.subr.bf16.mxu0 %v2843_v6  ;;  %v3793_v6 = vld [vmem:[#allocation26_spill] sm:$0xff] }
  0x86   :  { %657 = vmatmul.mubr.f32.vlgmr.msra.gmra.mrb[0].mxu0 %v3792_v17  ;;  %v3634_v17 = vand.u32 4294901760, %v2971_v20 }
  0x87   :  { %2174 = vmatpush1.bf16.msra.mxu0 %v2849_v16  ;;  %823 = vmatprep.mubr.f32.mxu0 %v3752_v41  ;;  %v42_v16 = vld [vmem:[%s3552_s2 + $0xd0] sm:$0xff] }
  0x88   :  { %2176 = vmatprep.subr.bf16.mxu0 %v2855_v2  ;;  %v43_v2 = vld [vmem:[%s3552_s2 + $0xd8] sm:$0xff] }
  0x8b   :  { %2178 = vmatpush1.bf16.msra.mxu0 %v2861_v43  ;;  %v1034_v43 = vand.u32 4294901760, %v42_v16 }
  0x8c   :  { %2180 = vmatprep.subr.bf16.mxu0 %v2867_v11  ;;  %v1037_v11 = vand.u32 4294901760, %v43_v2 }
  0x8d   :  { %v3187_v44 = vsub.f32 %v42_v16, %v1034_v43 }
  0x8f   :  { %2182 = vmatpush1.bf16.msra.mxu0 %v2873_v24  ;;  %v26_v24 = vld [vmem:[%s3552_s2 + $0x50] sm:$0xff]  ;;  %3799 = vst [vmem:[#allocation6_spill] sm:$0xff] %v3187_v44 }
  0x90   :  { %2184 = vmatprep.subr.bf16.mxu0 %v2879_v56  ;;  %v27_v56 = vld [vmem:[%s3552_s2 + $0x58] sm:$0xff] }
  0x93   :  { %2186 = vmatpush1.bf16.msra.mxu0 %v2885_v42  ;;  %v986_v42 = vand.u32 4294901760, %v26_v24 }
  0x94   :  { %2188 = vmatprep.subr.bf16.mxu0 %v3793_v6  ;;  %v3626_v6 = vand.u32 4294901760, %v2984_v26 }
  0x97   :  { %2190 = vmatpush1.bf16.msra.mxu0 %v3794_v23 }
  0x98   :  { %2192 = vmatprep.subr.bf16.mxu0 %v2903_v63 }
  0x9b   :  { %2194 = vmatpush1.bf16.msra.mxu0 %v2909_v4  ;;  %v44_v4 = vld [vmem:[%s3552_s2 + $0xe0] sm:$0xff] }
  0x9c   :  { %2196 = vmatprep.subr.bf16.mxu0 %v2913_v49  ;;  %v45_v49 = vld [vmem:[%s3552_s2 + $0xe8] sm:$0xff] }
  0x9f   :  { %2198 = vmatpush1.bf16.msra.mxu0 %v2915_v5  ;;  %v1040_v5 = vand.u32 4294901760, %v44_v4 }
  0xa0   :  { %2200 = vmatprep.subr.bf16.mxu0 %v2917_v47  ;;  %v1043_v47 = vand.u32 4294901760, %v45_v49 }
  0xa2   :  { %v3177_v58 = vpack.c.bf16 %v1043_v47, %v1040_v5 }
  0xa3   :  { %2202 = vmatpush1.bf16.msra.mxu0 %v2919_v12  ;;  %v3159_v12 = vpack.c.bf16 %v1037_v11, %v1034_v43 }
  0xa4   :  { %2204 = vmatprep.subr.bf16.mxu0 %v3775_v34  ;;  %3797 = vst [vmem:[#allocation5_spill] sm:$0xff] %v3177_v58  ;;  %v47_v34 = vld [vmem:[%s3552_s2 + $0xf8] sm:$0xff] }
  0xa5   :  { %3795 = vst [vmem:[#allocation21_spill] sm:$0xff] %v3159_v12  ;;  %2256 = vmatprep.subr.bf16.mxu1 %v3159_v12 }
  0xa6   :  { %825 = vmatmul.mubr.f32.vlgmr.msra.gmra.mrb[0].mxu0 %v2675_v48 }
  0xa7   :  { %2206 = vmatpush1.bf16.msra.mxu0 %v3777_v50  ;;  %927 = vmatprep.mubr.f32.mxu0 %v3752_v41  ;;  %v28_v41 = vld [vmem:[%s3552_s2 + $0x60] sm:$0xff]  ;;  %v3189_v50 = vsub.f32 %v43_v2, %v1037_v11 }
  0xa8   :  { %2208 = vmatprep.subr.bf16.mxu0 %v3778_v3  ;;  %v992_v30 = vand.u32 4294901760, %v28_v41  ;;  %v3191_v3 = vsub.f32 %v26_v24, %v986_v42 }
  0xa9   :  { %3800 = vst [vmem:[#allocation7_spill] sm:$0xff] %v3189_v50 }
  0xaa   :  { %v3179_v46 = vpack.c.bf16 %v995_v59, %v992_v30  ;;  %3801 = vst [vmem:[#allocation8_spill] sm:$0xff] %v3191_v3 }
  0xab   :  { %2210 = vmatpush1.bf16.msra.mxu0 %v3779_v18 }
  0xac   :  { %2212 = vmatprep.subr.bf16.mxu0 %v3780_v32  ;;  %3798 = vst [vmem:[#allocation23_spill] sm:$0xff] %v3179_v46  ;;  %v30_v32 = vld [vmem:[%s3552_s2 + $0x70] sm:$0xff] }
  0xaf   :  { %2214 = vmatpush1.bf16.msra.mxu0 %v3781_v62  ;;  %v31_v62 = vld [vmem:[%s3552_s2 + $0x78] sm:$0xff]  ;;  %s2470_s2 = smov [#allocation2]  }
  0xb0   :  { %2216 = vmatprep.subr.bf16.mxu0 %v3782_v22  ;;  %v3202_v22 = vsub.f32 %v44_v4, %v1040_v5  ;;  %v1078_v4 = vsub.f32 %v2984_v26, %v3626_v6  ;;  %v3627_v5 = vand.u32 4294901760, %v2995_v51  ;;  %s1825_s4 = sshll.u32 %s2470_s2, 4  ;;  %s1826_s4 = int_to_ptr.vmem [resolvable:$true] %s1825_s4 }
  0xb1   :  { %s2442_s5 = scalar_lea.vmem %s1826_s4, 128  ;;  %p2447_p1 = scmp.lt.s32.totalorder %s1826_s4, %s1826_s4 }
  0xb2   :  { %3803 = vst [vmem:[#allocation10_spill] sm:$0xff] %v3202_v22  ;;  %p2443_p0 = scmp.ne.s32.totalorder %s1826_s4, %s2442_s5  ;;  %p2448_p2 = scmp.lt.s32.totalorder %s2442_s5, %s2442_s5 }
  0xb3   :  { %2218 = vmatpush1.bf16.msra.mxu0 %v3783_v35  ;;  %v3204_v35 = vsub.f32 %v45_v49, %v1043_v47  ;;  %v3625_v49 = vand.u32 4294901760, %v2986_v39 }
  0xb4   :  { %2220 = vmatprep.subr.bf16.mxu0 %v3784_v10  ;;  %v3207_v10 = vsub.f32 %v28_v41, %v992_v30  ;;  %p2449_p3 = por %p2448_p2, %p2447_p1 }
  0xb5   :  { %3804 = vst [vmem:[#allocation11_spill] sm:$0xff] %v3204_v35 }
  0xb6   :  { %3805 = vst [vmem:[#allocation12_spill] sm:$0xff] %v3207_v10  ;;  %p2450_p4 = pnand %p2449_p3, %p2443_p0 }
  0xb7   :  { %2222 = vmatpush1.bf16.msra.mxu0 %v3785_v45  ;;  %v3209_v45 = vsub.f32 %v29_v27, %v995_v59  ;;  %v3813_v27 = vld [vmem:[#allocation31_spill] sm:$0xff]  ;;  %v3814_v59 = vld [vmem:[#allocation32_spill] sm:$0xff] }
  0xb8   :  { %2224 = vmatprep.subr.bf16.mxu0 %v3786_v36  ;;  %v1046_v36 = vand.u32 4294901760, %v46_v33  ;;  %v3628_v30 = vand.u32 4294901760, %v3813_v27 }
  0xb9   :  { %3806 = vst [vmem:[#allocation13_spill] sm:$0xff] %v3209_v45 }
  0xba   :  { %v3217_v16 = vsub.f32 %v46_v33, %v1046_v36  ;;  %v3629_v33 = vand.u32 4294901760, %v3814_v59 }
  0xbb   :  { %2226 = vmatpush1.bf16.msra.mxu0 %v3787_v21  ;;  %v1049_v21 = vand.u32 4294901760, %v47_v34 }
  0xbc   :  { %2228 = vmatprep.subr.bf16.mxu0 %v3788_v37  ;;  %v998_v37 = vand.u32 4294901760, %v30_v32  ;;  %3808 = vst [vmem:[#allocation16_spill] sm:$0xff] %v3217_v16  ;;  %v3671_v12 = vand.u32 4294901760, %v3217_v16 }
  0xbd   :  { %v3215_v23 = vpack.c.bf16 %v1049_v21, %v1046_v36  ;;  %v3219_v2 = vsub.f32 %v47_v34, %v1049_v21  ;;  %v1204_v36 = vsub.f32 %v2995_v51, %v3627_v5 }
  0xbe   :  { %v3223_v11 = vsub.f32 %v30_v32, %v998_v37  ;;  %v1079_v32 = vand.u32 4294901760, %v1078_v4 }
  0xbf   :  { %2230 = vmatpush1.bf16.msra.mxu0 %v3789_v55  ;;  %v1001_v55 = vand.u32 4294901760, %v31_v62  ;;  %3807 = vst [vmem:[#allocation14_spill] sm:$0xff] %v3215_v23  ;;  %3809 = vst [vmem:[#allocation17_spill] sm:$0xff] %v3219_v2  ;;  %v1205_v4 = vand.u32 4294901760, %v1204_v36 }
  0xc0   :  { %2232 = vmatprep.subr.bf16.mxu0 %v3790_v31  ;;  %v3637_v31 = vand.u32 4294901760, %v2967_v14  ;;  %3811 = vst [vmem:[#allocation20_spill] sm:$0xff] %v3223_v11 }
  0xc1   :  { %v3221_v43 = vpack.c.bf16 %v1001_v55, %v998_v37  ;;  %v3225_v24 = vsub.f32 %v31_v62, %v1001_v55  ;;  %v1197_v62 = vsub.f32 %v2986_v39, %v3625_v49  ;;  %v1085_v37 = vsub.f32 %v3813_v27, %v3628_v30 }
  0xc2   :  { %v1092_v55 = vsub.f32 %v3814_v59, %v3629_v33  ;;  %v3630_v49 = vand.u32 4294901760, %v3029_v0 }
  0xc3   :  { %2234 = vmatpush1.bf16.msra.mxu0 %v3791_v1  ;;  %v3636_v1 = vand.u32 4294901760, %v2969_v25  ;;  %3810 = vst [vmem:[#allocation18_spill] sm:$0xff] %v3221_v43  ;;  %3812 = vst [vmem:[#allocation24_spill] sm:$0xff] %v3225_v24  ;;  %v1086_v6 = vand.u32 4294901760, %v1085_v37  ;;  %v3635_v37 = vand.u32 4294901760, %v3044_v8 }
  0xc4   :  { %v1093_v5 = vand.u32 4294901760, %v1092_v55 }
  0xc6   :  { %929 = vmatmul.mubr.f32.vlgmr.msra.gmra.mrb[0].mxu0 %v2675_v48  ;;  %v989_v48 = vand.u32 4294901760, %v27_v56  ;;  %v3271_v36 = vpack.c.bf16 %v1093_v5, %v1086_v6  ;;  %v1225_v6 = vsub.f32 %v3044_v8, %v3635_v37  ;;  %v3640_v5 = vand.u32 4294901760, %v3053_v52 }
  0xc7   :  { %v3643_v37 = vand.u32 4294901760, %v3055_v53 }
  0xc8   :  { %v3161_v63 = vpack.c.bf16 %v989_v48, %v986_v42  ;;  %v3193_v18 = vsub.f32 %v27_v56, %v989_v48  ;;  %v1183_v56 = vsub.f32 %v2967_v14, %v3637_v31  ;;  %v1190_v42 = vsub.f32 %v2969_v25, %v3636_v1 }
  0xc9   :  { %v1071_v48 = vsub.f32 %v2971_v20, %v3634_v17  ;;  %v1226_v17 = vand.u32 4294901760, %v1225_v6  ;;  %v3646_v1 = vand.u32 4294901760, %v3062_v57  ;;  %v3649_v31 = vand.u32 4294901760, %v3064_v60 }
  0xca   :  { %3796 = vst [vmem:[#allocation22_spill] sm:$0xff] %v3161_v63  ;;  %2258 = vmatpush3.bf16.msra.mxu1 %v3161_v63  ;;  %3802 = vst [vmem:[#allocation9_spill] sm:$0xff] %v3193_v18  ;;  %v1184_v47 = vand.u32 4294901760, %v1183_v56  ;;  %v1191_v41 = vand.u32 4294901760, %v1190_v42  ;;  %v3631_v56 = vand.u32 4294901760, %v3027_v28 }
  0xcb   :  { %2260 = vmatprep.subr.bf16.mxu1 %v3177_v58  ;;  %v1072_v34 = vand.u32 4294901760, %v1071_v48  ;;  %v1198_v48 = vand.u32 4294901760, %v1197_v62  ;;  %v1246_v6 = vsub.f32 %v3062_v57, %v3646_v1  ;;  %v3654_v1 = vand.u32 4294901760, %v3189_v50 }
  0xcc   :  { %v2267_v21 = vpack.c.bf16 %v1191_v41, %v1184_v47  ;;  %v1211_v47 = vsub.f32 %v3027_v28, %v3631_v56  ;;  %v3632_v41 = vand.u32 4294901760, %v3031_v61  ;;  %v3665_v58 = vand.u32 4294901760, %v3207_v10 }
  0xcd   :  { %v3258_v42 = vpack.c.bf16 %v1079_v32, %v1072_v34  ;;  %v3265_v30 = vpack.c.bf16 %v1205_v4, %v1198_v48  ;;  %v1218_v34 = vsub.f32 %v3029_v0, %v3630_v49  ;;  %v3815_v32 = vld [vmem:[#allocation33_spill] sm:$0xff]  ;;  %v3638_v4 = vand.u32 4294901760, %v3046_v40 }
  0xce   :  { %2262 = vmatpush3.bf16.msra.mxu1 %v3179_v46  ;;  %v3633_v62 = vand.u32 4294901760, %v3815_v32  ;;  %v1212_v33 = vand.u32 4294901760, %v1211_v47  ;;  %v3639_v49 = vand.u32 4294901760, %v3048_v13 }
  0xcf   :  { %2264 = vmatprep.subr.bf16.mxu1 %v3215_v23  ;;  %v1219_v55 = vand.u32 4294901760, %v1218_v34  ;;  %v1232_v34 = vsub.f32 %v3046_v40, %v3638_v4  ;;  %v3650_v23 = vand.u32 4294901760, %v3187_v44 }
  0xd0   :  { %v1106_v48 = vsub.f32 %v3815_v32, %v3633_v62  ;;  %v1113_v62 = vsub.f32 %v3048_v13, %v3639_v49  ;;  %v1239_v49 = vsub.f32 %v3055_v53, %v3643_v37 }
  0xd1   :  { %v3286_v47 = vpack.c.bf16 %v1219_v55, %v1212_v33  ;;  %v1233_v55 = vand.u32 4294901760, %v1232_v34  ;;  %v1247_v34 = vand.u32 4294901760, %v1246_v6 }
  0xd2   :  { %2266 = vmatpush3.bf16.msra.mxu1 %v3221_v43 }
  0xd3   :  { %2268 = vmatprep.subr.bf16.mxu1 %v2267_v21  ;;  %v1099_v21 = vsub.f32 %v3031_v61, %v3632_v41  ;;  %v1107_v41 = vand.u32 4294901760, %v1106_v48  ;;  %v1114_v48 = vand.u32 4294901760, %v1113_v62  ;;  %v3309_v43 = vpack.c.bf16 %v1233_v55, %v1226_v17 }
  0xd4   :  { %v1240_v62 = vand.u32 4294901760, %v1239_v49  ;;  %v3655_v17 = vand.u32 4294901760, %v3191_v3  ;;  %v1253_v49 = vsub.f32 %v3187_v44, %v3650_v23 }
  0xd5   :  { %v1100_v56 = vand.u32 4294901760, %v1099_v21  ;;  %v1120_v21 = vsub.f32 %v3053_v52, %v3640_v5  ;;  %v3651_v5 = vand.u32 4294901760, %v3071_v9 }
  0xd6   :  { %v3322_v55 = vpack.c.bf16 %v1247_v34, %v1240_v62  ;;  %v3657_v62 = vand.u32 4294901760, %v3202_v22  ;;  %v3662_v34 = vand.u32 4294901760, %v3204_v35 }
  0xd7   :  { %v3299_v33 = vpack.c.bf16 %v1107_v41, %v1100_v56  ;;  %v1121_v4 = vand.u32 4294901760, %v1120_v21  ;;  %v1127_v56 = vsub.f32 %v3064_v60, %v3649_v31  ;;  %v1134_v21 = vsub.f32 %v3071_v9, %v3651_v5 }
  0xd8   :  { %v3656_v31 = vand.u32 4294901760, %v3193_v18 }
  0xd9   :  { %v3314_v41 = vpack.c.bf16 %v1121_v4, %v1114_v48  ;;  %v1128_v37 = vand.u32 4294901760, %v1127_v56  ;;  %v1135_v46 = vand.u32 4294901760, %v1134_v21  ;;  %v1260_v4 = vsub.f32 %v3189_v50, %v3654_v1 }
  0xda   :  { %v1141_v48 = vsub.f32 %v3191_v3, %v3655_v17  ;;  %v1148_v56 = vsub.f32 %v3193_v18, %v3656_v31  ;;  %v1254_v21 = vand.u32 4294901760, %v1253_v49  ;;  %v1267_v17 = vsub.f32 %v3202_v22, %v3657_v62 }
  0xdb   :  { %v3334_v6 = vpack.c.bf16 %v1135_v46, %v1128_v37  ;;  %v1261_v23 = vand.u32 4294901760, %v1260_v4  ;;  %v1274_v46 = vsub.f32 %v3204_v35, %v3662_v34  ;;  %v3666_v37 = vand.u32 4294901760, %v3209_v45 }
  0xdc   :  { %v1142_v5 = vand.u32 4294901760, %v1141_v48  ;;  %v1149_v1 = vand.u32 4294901760, %v1148_v56  ;;  %v1155_v49 = vsub.f32 %v3207_v10, %v3665_v58  ;;  %v1268_v48 = vand.u32 4294901760, %v1267_v17 }
  0xdd   :  { %v3349_v31 = vpack.c.bf16 %v1261_v23, %v1254_v21  ;;  %v1275_v56 = vand.u32 4294901760, %v1274_v46  ;;  %v1162_v62 = vsub.f32 %v3209_v45, %v3666_v37  ;;  %v3672_v34 = vand.u32 4294901760, %v3219_v2 }
  0xde   :  { %v3354_v4 = vpack.c.bf16 %v1149_v1, %v1142_v5  ;;  %v1156_v63 = vand.u32 4294901760, %v1155_v49  ;;  %v3673_v23 = vand.u32 4294901760, %v3223_v11  ;;  %v3674_v58 = vand.u32 4294901760, %v3225_v24 }
  0xdf   :  { %v3362_v21 = vpack.c.bf16 %v1275_v56, %v1268_v48  ;;  %v1163_v29 = vand.u32 4294901760, %v1162_v62  ;;  %v1281_v1 = vsub.f32 %v3217_v16, %v3671_v12  ;;  %v1288_v5 = vsub.f32 %v3219_v2, %v3672_v34 }
  0xe0   :  { %v1169_v17 = vsub.f32 %v3223_v11, %v3673_v23  ;;  %v1176_v49 = vsub.f32 %v3225_v24, %v3674_v58  ;;  %v2299_v12 = vpack.c.bf16 %v2969_v25, %v2967_v14  ;;  %v2301_v34 = vpack.c.bf16 %v2984_v26, %v2971_v20 }
  0xe1   :  { %v2293_v46 = vpack.c.bf16 %v1163_v29, %v1156_v63  ;;  %v1282_v62 = vand.u32 4294901760, %v1281_v1  ;;  %v1289_v48 = vand.u32 4294901760, %v1288_v5  ;;  %v2303_v23 = vpack.c.bf16 %v2995_v51, %v2986_v39 }
  0xe2   :  { %v1170_v56 = vand.u32 4294901760, %v1169_v17  ;;  %v1177_v37 = vand.u32 4294901760, %v1176_v49  ;;  %v2305_v29 = vpack.c.bf16 %v3814_v59, %v3813_v27  ;;  %v2307_v63 = vpack.c.bf16 %v3029_v0, %v3027_v28 }
  0xe3   :  { %v2295_v15 = vpack.c.bf16 %v1289_v48, %v1282_v62  ;;  %v2309_v1 = vpack.c.bf16 %v3815_v32, %v3031_v61  ;;  %v2313_v5 = vpack.c.bf16 %v3053_v52, %v3048_v13  ;;  %v2315_v17 = vpack.c.bf16 %v3062_v57, %v3055_v53  ;;  %v940_v53 = vpop.permute.xlu0 %939 }
  0xe4   :  { %v2297_v54 = vpack.c.bf16 %v1177_v37, %v1170_v56  ;;  %v2311_v37 = vpack.c.bf16 %v3046_v40, %v3044_v8  ;;  %v2317_v49 = vpack.c.bf16 %v3071_v9, %v3064_v60  ;;  %v2319_v62 = vpack.c.bf16 %v3189_v50, %v3187_v44  ;;  %v937_v44 = vpop.permute.xlu1 %936 }
  0xe5   :  { %v2321_v48 = vpack.c.bf16 %v3193_v18, %v3191_v3  ;;  %v2323_v56 = vpack.c.bf16 %v3204_v35, %v3202_v22  ;;  %v2325_v58 = vpack.c.bf16 %v3209_v45, %v3207_v10  ;;  %v2327_v52 = vpack.c.bf16 %v3219_v2, %v3217_v16 }
  0xe6   :  { %v2329_v57 = vpack.c.bf16 %v3225_v24, %v3223_v11  ;;  %v949_v60 = vsel %vm948_vm2, %v937_v44, %v940_v53 }
  0xe7   :  { %v943_v9 = vpop.permute.xlu0 %942 }
  0xe8   :  { %v950_v50 = vsel %vm945_vm0, %v940_v53, %v943_v9 }
  0xe9   :  { %v951_v18 = vsel %vm946_vm1, %v950_v50, %v943_v9  ;;  %v3823_v50 = vld [vmem:[#allocation21_spill] sm:$0xff] }
  0xea   :  { %v952_v13 = vsel %vm948_vm2, %v951_v18, %v937_v44  ;;  %v3826_v18 = vld [vmem:[#allocation23_spill] sm:$0xff] }
 0x199   :  { %v930_v3 = vpop.f32.mrb[0].mxu0 }
 0x19a   :  { %v953_v35 = vmul.f32 %v949_v60, %v930_v3  ;;  %v932_v22 = vpop.f32.mrb[1].mxu0  ;;  %v3824_v3 = vld [vmem:[#allocation22_spill] sm:$0xff] }
 0x19b   :  { %v954_v45 = vmul.f32 %v952_v13, %v932_v22  ;;  %v3816_v13 = vld [vmem:[#allocation15_spill] sm:$0xff]  ;;  %v3827_v22 = vld [vmem:[#allocation14_spill] sm:$0xff] }
 0x19c   :  { %v3409_v10 = vand.u32 4294901760, %v953_v35 }
 0x19d   :  { %v3411_v2 = vand.u32 4294901760, %v954_v45 }
 0x19e   :  { %v3414_v24 = vsub.f32 %v953_v35, %v3409_v10  ;;  %v3828_v35 = vand.u32 4294901760, %v2967_v14  ;;  %v3835_v14 = vand.u32 4294901760, %v3813_v27 }
 0x19f   :  { %v1052_v11 = vsub.f32 %v954_v45, %v3411_v2  ;;  %v3829_v45 = vand.u32 4294901760, %v2969_v25  ;;  %v3836_v25 = vand.u32 4294901760, %v3814_v59  ;;  %v3844_v59 = vld [vmem:[#allocation35_spill] sm:$0xff] }
 0x1a0   :  { %v1059_v16 = vand.u32 4294901760, %v3414_v24 }
 0x1a1   :  { %v1053_v40 = vand.u32 4294901760, %v1052_v11 }
 0x1a2   :  { %v1060_v53 = vsub.f32 %v3414_v24, %v1059_v16 }
 0x1a3   :  { %v1054_v60 = vsub.f32 %v1052_v11, %v1053_v40 }
 0x1a4   :  { %v1061_v44 = vand.u32 4294901760, %v1060_v53  ;;  %v3860_v53 = vld [vmem:[#allocation8_spill] sm:$0xff] }
 0x1a5   :  { %v1055_v9 = vand.u32 4294901760, %v1054_v60  ;;  %v3861_v60 = vand.u32 4294901760, %v3860_v53 }
 0x1a7   :  { %1056 = vmatprep.mubr.f32.mxu1 %v1055_v9  ;;  %v3862_v9 = vld [vmem:[#allocation9_spill] sm:$0xff] }
 0x1a8   :  { %1062 = vmatmul.mubr.f32.vlgmr.msra.gmra.mrb[0].mxu1 %v1061_v44  ;;  %v3863_v44 = vand.u32 4294901760, %v3862_v9 }
 0x1a9   :  { %2270 = vmatpush3.bf16.msra.mxu1 %v3258_v42  ;;  %1292 = vmatprep.mubr.f32.mxu1 %v3411_v2 }
 0x1aa   :  { %2272 = vmatprep.subr.bf16.mxu1 %v3265_v30  ;;  %v3832_v30 = vand.u32 4294901760, %v2984_v26  ;;  %v3837_v26 = vand.u32 4294901760, %v3027_v28 }
 0x1ad   :  { %2274 = vmatpush3.bf16.msra.mxu1 %v3271_v36  ;;  %v3833_v36 = vand.u32 4294901760, %v2986_v39 }
 0x1ae   :  { %2276 = vmatprep.subr.bf16.mxu1 %v3286_v47  ;;  %v3834_v47 = vand.u32 4294901760, %v2995_v51  ;;  %v3839_v51 = vand.u32 4294901760, %v3031_v61 }
 0x1b1   :  { %2278 = vmatpush3.bf16.msra.mxu1 %v3299_v33  ;;  %v2367_v33 = vpack.c.bf16 %v3834_v47, %v3833_v36  ;;  %v3868_v36 = vld [vmem:[#allocation12_spill] sm:$0xff] }
 0x1b2   :  { %2280 = vmatprep.subr.bf16.mxu1 %v3309_v43  ;;  %v3830_v43 = vld [vmem:[#allocation18_spill] sm:$0xff]  ;;  %v3869_v47 = vand.u32 4294901760, %v3868_v36 }
 0x1b5   :  { %2282 = vmatpush3.bf16.msra.mxu1 %v3314_v41  ;;  %v3838_v41 = vand.u32 4294901760, %v3029_v0  ;;  %v3848_v0 = vld [vmem:[#allocation37_spill] sm:$0xff] }
 0x1b6   :  { %2284 = vmatprep.subr.bf16.mxu1 %v3322_v55  ;;  %v3841_v55 = vand.u32 4294901760, %v3044_v8 }
 0x1b7   :  { %v2371_v39 = vpack.c.bf16 %v3838_v41, %v3837_v26  ;;  %v3874_v41 = vld [vmem:[#allocation17_spill] sm:$0xff] }
 0x1b9   :  { %2286 = vmatpush3.bf16.msra.mxu1 %v3334_v6  ;;  %v3842_v6 = vld [vmem:[#allocation34_spill] sm:$0xff] }
 0x1ba   :  { %2288 = vmatprep.subr.bf16.mxu1 %v3349_v31  ;;  %v2363_v31 = vpack.c.bf16 %v3829_v45, %v3828_v35  ;;  %v3843_v27 = vand.u32 4294901760, %v3842_v6  ;;  %v2385_v35 = vpack.c.bf16 %v3863_v44, %v3861_v60  ;;  %v3864_v45 = vld [vmem:[#allocation10_spill] sm:$0xff] }
 0x1bd   :  { %2290 = vmatpush3.bf16.msra.mxu1 %v3354_v4  ;;  %v3845_v4 = vand.u32 4294901760, %v3844_v59 }
 0x1be   :  { %2292 = vmatprep.subr.bf16.mxu1 %v3362_v21 }
 0x1c1   :  { %2294 = vmatpush3.bf16.msra.mxu1 %v2293_v46  ;;  %v3849_v46 = vand.u32 4294901760, %v3848_v0 }
 0x1c2   :  { %2296 = vmatprep.subr.bf16.mxu1 %v2295_v15  ;;  %v3818_v15 = vld [vmem:[#allocation29_spill] sm:$0xff] }
 0x1c5   :  { %2298 = vmatpush3.bf16.msra.mxu1 %v2297_v54  ;;  %v3817_v54 = vld [vmem:[#allocation28_spill] sm:$0xff] }
 0x1c6   :  { %2300 = vmatprep.subr.bf16.mxu1 %v2299_v12  ;;  %v3819_v12 = vld [vmem:[#allocation30_spill] sm:$0xff] }
 0x1c8   :  { %1294 = vmatmul.mubr.f32.vlgmr.msra.gmra.mrb[2].mxu1 %v3409_v10 }
 0x1c9   :  { %2302 = vmatpush3.bf16.msra.mxu1 %v2301_v34  ;;  %1429 = vmatprep.mubr.f32.mxu1 %v1052_v11  ;;  %v3831_v11 = vand.u32 4294901760, %v2971_v20  ;;  %v2369_v20 = vpack.c.bf16 %v3836_v25, %v3835_v14  ;;  %v2375_v34 = vpack.c.bf16 %v3843_v27, %v3841_v55  ;;  %v3878_v55 = vld [vmem:[#allocation24_spill] sm:$0xff] }
 0x1ca   :  { %2304 = vmatprep.subr.bf16.mxu1 %v2303_v23  ;;  %v3846_v23 = vld [vmem:[#allocation36_spill] sm:$0xff]  ;;  %v3879_v6 = vand.u32 4294901760, %v3878_v55 }
 0x1cb   :  { %v2365_v42 = vpack.c.bf16 %v3832_v30, %v3831_v11  ;;  %v3847_v28 = vand.u32 4294901760, %v3846_v23  ;;  %v3866_v11 = vld [vmem:[#allocation11_spill] sm:$0xff] }
 0x1cc   :  { %v3867_v30 = vand.u32 4294901760, %v3866_v11 }
 0x1cd   :  { %2306 = vmatpush3.bf16.msra.mxu1 %v2305_v29  ;;  %v2377_v21 = vpack.c.bf16 %v3847_v28, %v3845_v4  ;;  %v3850_v29 = vld [vmem:[#allocation38_spill] sm:$0xff] }
 0x1ce   :  { %2308 = vmatprep.subr.bf16.mxu1 %v2307_v63  ;;  %v3851_v61 = vand.u32 4294901760, %v3850_v29 }
 0x1d0   :  { %v2379_v63 = vpack.c.bf16 %v3851_v61, %v3849_v46 }
 0x1d1   :  { %2310 = vmatpush3.bf16.msra.mxu1 %v2309_v1 }
 0x1d2   :  { %2312 = vmatprep.subr.bf16.mxu1 %v2311_v37  ;;  %v3854_v37 = vld [vmem:[#allocation41_spill] sm:$0xff] }
 0x1d3   :  { %v3855_v8 = vand.u32 4294901760, %v3854_v37 }
 0x1d5   :  { %2314 = vmatpush3.bf16.msra.mxu1 %v2313_v5 }
 0x1d6   :  { %2316 = vmatprep.subr.bf16.mxu1 %v2315_v17  ;;  %v3856_v17 = vld [vmem:[#allocation6_spill] sm:$0xff] }
 0x1d9   :  { %2318 = vmatpush3.bf16.msra.mxu1 %v2317_v49  ;;  %v3857_v49 = vand.u32 4294901760, %v3856_v17 }
 0x1da   :  { %2320 = vmatprep.subr.bf16.mxu1 %v2319_v62  ;;  %v3858_v62 = vld [vmem:[#allocation7_spill] sm:$0xff] }
 0x1dd   :  { %2322 = vmatpush3.bf16.msra.mxu1 %v2321_v48  ;;  %v3859_v48 = vand.u32 4294901760, %v3858_v62 }
 0x1de   :  { %2324 = vmatprep.subr.bf16.mxu1 %v2323_v56 }
 0x1df   :  { %v2383_v56 = vpack.c.bf16 %v3859_v48, %v3857_v49 }
 0x1e1   :  { %2326 = vmatpush3.bf16.msra.mxu1 %v2325_v58  ;;  %v3820_v58 = vld [vmem:[#allocation40_spill] sm:$0xff] }
 0x1e2   :  { %2328 = vmatprep.subr.bf16.mxu1 %v2327_v52  ;;  %v3821_v52 = vld [vmem:[#allocation42_spill] sm:$0xff] }
 0x1e5   :  { %2330 = vmatpush3.bf16.msra.mxu1 %v2329_v57  ;;  %v3822_v57 = vld [vmem:[#allocation19_spill] sm:$0xff] }
 0x1e6   :  { %2332 = vmatprep.subr.bf16.mxu1 %v3816_v13 }
 0x1e8   :  { %1432 = vmatmul.mubr.f32.vlgmr.msra.gmra.mrb[4].mxu1 %v3414_v24  ;;  %v3840_v24 = vand.u32 4294901760, %v3815_v32  ;;  %v3852_v32 = vld [vmem:[#allocation39_spill] sm:$0xff] }
 0x1e9   :  { %2334 = vmatpush3.bf16.msra.mxu1 %v3817_v54  ;;  %1536 = vmatprep.mubr.f32.mxu1 %v1053_v40  ;;  %v3825_v40 = vld [vmem:[#allocation5_spill] sm:$0xff]  ;;  %v3853_v1 = vand.u32 4294901760, %v3852_v32 }
 0x1ea   :  { %2336 = vmatprep.subr.bf16.mxu1 %v3818_v15 }
 0x1eb   :  { %v2381_v5 = vpack.c.bf16 %v3855_v8, %v3853_v1 }
 0x1ed   :  { %2338 = vmatpush3.bf16.msra.mxu1 %v3819_v12 }
 0x1ee   :  { %2340 = vmatprep.subr.bf16.mxu1 %v3025_v19 }
 0x1f1   :  { %2342 = vmatpush3.bf16.msra.mxu1 %v3038_v38 }
 0x1f2   :  { %2344 = vmatprep.subr.bf16.mxu1 %v3051_v7 }
 0x1f5   :  { %2346 = vmatpush3.bf16.msra.mxu1 %v3820_v58 }
 0x1f6   :  { %2348 = vmatprep.subr.bf16.mxu1 %v3821_v52 }
 0x1f9   :  { %2350 = vmatpush3.bf16.msra.mxu1 %v3822_v57 }
 0x1fa   :  { %2352 = vmatprep.subr.bf16.mxu1 %v3823_v50 }
 0x1fd   :  { %2354 = vmatpush3.bf16.msra.mxu1 %v3824_v3 }
 0x1fe   :  { %2356 = vmatprep.subr.bf16.mxu1 %v3825_v40 }
 0x201   :  { %2358 = vmatpush3.bf16.msra.mxu1 %v3826_v18 }
 0x202   :  { %2360 = vmatprep.subr.bf16.mxu1 %v3827_v22 }
 0x205   :  { %2362 = vmatpush3.bf16.msra.mxu1 %v3830_v43 }
 0x206   :  { %2364 = vmatprep.subr.bf16.mxu1 %v2363_v31  ;;  %v3865_v31 = vand.u32 4294901760, %v3864_v45 }
 0x208   :  { %1540 = vmatmul.mubr.f32.vlgmr.msra.gmra.mrb[6].mxu1 %v1059_v16  ;;  %v2373_v16 = vpack.c.bf16 %v3840_v24, %v3839_v51  ;;  %v3876_v24 = vld [vmem:[#allocation20_spill] sm:$0xff] }
 0x209   :  { %2366 = vmatpush3.bf16.msra.mxu1 %v2365_v42  ;;  %1706 = vmatprep.mubr.f32.mxu1 %v3411_v2  ;;  %v2387_v42 = vpack.c.bf16 %v3867_v30, %v3865_v31 }
 0x20a   :  { %2368 = vmatprep.subr.bf16.mxu1 %v2367_v33  ;;  %v3870_v33 = vld [vmem:[#allocation13_spill] sm:$0xff] }
 0x20b   :  { %v3871_v14 = vand.u32 4294901760, %v3870_v33 }
 0x20d   :  { %2370 = vmatpush3.bf16.msra.mxu1 %v2369_v20  ;;  %v2389_v25 = vpack.c.bf16 %v3871_v14, %v3869_v47  ;;  %v3872_v20 = vld [vmem:[#allocation16_spill] sm:$0xff] }
 0x20e   :  { %2372 = vmatprep.subr.bf16.mxu1 %v2371_v39  ;;  %v3873_v26 = vand.u32 4294901760, %v3872_v20  ;;  %v3875_v39 = vand.u32 4294901760, %v3874_v41 }
 0x210   :  { %v2391_v51 = vpack.c.bf16 %v3875_v39, %v3873_v26 }
 0x211   :  { %2374 = vmatpush3.bf16.msra.mxu1 %v2373_v16  ;;  %v3877_v16 = vand.u32 4294901760, %v3876_v24 }
 0x212   :  { %2376 = vmatprep.subr.bf16.mxu1 %v2375_v34 }
 0x213   :  { %v2393_v27 = vpack.c.bf16 %v3879_v6, %v3877_v16 }
 0x215   :  { %2378 = vmatpush3.bf16.msra.mxu1 %v2377_v21 }
 0x216   :  { %2380 = vmatprep.subr.bf16.mxu1 %v2379_v63 }
 0x219   :  { %2382 = vmatpush3.bf16.msra.mxu1 %v2381_v5 }
 0x21a   :  { %2384 = vmatprep.subr.bf16.mxu1 %v2383_v56 }
 0x21d   :  { %2386 = vmatpush3.bf16.msra.mxu1 %v2385_v35 }
 0x21e   :  { %2388 = vmatprep.subr.bf16.mxu1 %v2387_v42 }
 0x221   :  { %2390 = vmatpush3.bf16.msra.mxu1 %v2389_v25 }
 0x222   :  { %2392 = vmatprep.subr.bf16.mxu1 %v2391_v51 }
 0x225   :  { %2394 = vmatpush3.bf16.msra.mxu1 %v2393_v27 }
 0x226   :  { %2396 = vmatprep.subr.bf16.mxu1 %v3816_v13 }
 0x228   :  { %1708 = vmatmul.mubr.f32.vlgmr.msra.gmra.mrb[8].mxu1 %v3409_v10 }
 0x229   :  { %2398 = vmatpush3.bf16.msra.mxu1 %v3817_v54  ;;  %1810 = vmatprep.mubr.f32.mxu1 %v3411_v2 }
 0x22a   :  { %2400 = vmatprep.subr.bf16.mxu1 %v3818_v15 }
 0x22d   :  { %2402 = vmatpush3.bf16.msra.mxu1 %v3819_v12 }
 0x22e   :  { %2404 = vmatprep.subr.bf16.mxu1 %v3025_v19 }
 0x231   :  { %2406 = vmatpush3.bf16.msra.mxu1 %v3038_v38 }
 0x232   :  { %2408 = vmatprep.subr.bf16.mxu1 %v3051_v7 }
 0x235   :  { %2410 = vmatpush3.bf16.msra.mxu1 %v3820_v58 }
 0x236   :  { %2412 = vmatprep.subr.bf16.mxu1 %v3821_v52 }
 0x239   :  { %2414 = vmatpush3.bf16.msra.mxu1 %v3822_v57 }
 0x23a   :  { %2416 = vmatprep.subr.bf16.mxu1 %v3823_v50 }
 0x23d   :  { %2418 = vmatpush3.bf16.msra.mxu1 %v3824_v3 }
 0x23e   :  { %2420 = vmatprep.subr.bf16.mxu1 %v3825_v40 }
 0x241   :  { %2422 = vmatpush3.bf16.msra.mxu1 %v3826_v18 }
 0x242   :  { %2424 = vmatprep.subr.bf16.mxu1 %v3827_v22 }
 0x245   :  { %2426 = vmatpush3.bf16.msra.mxu1 %v3830_v43 }
 0x248   :  { %1812 = vmatmul.mubr.f32.vlgmr.msra.gmra.mrb[10].mxu1 %v3409_v10 }
 0x27b   :  { %v1865_v38 = vpop.f32.mrb[0].mxu1 }
 0x27c   :  { %v1866_v19 = vpop.f32.mrb[1].mxu1 }
 0x27d   :  { %v1867_v7 = vadd.f32 %v1866_v19, %v1865_v38 }
 0x29b   :  { %v1900_v2 = vpop.f32.mrb[2].mxu1 }
 0x29c   :  { %v1901_v13 = vpop.f32.mrb[3].mxu1 }
 0x29d   :  { %v1902_v54 = vadd.f32 %v1901_v13, %v1900_v2 }
 0x29f   :  { %v1296_v15 = vadd.f32 %v1902_v54, %v1867_v7 }
 0x2bb   :  { %v1935_v12 = vpop.f32.mrb[4].mxu1 }
 0x2bc   :  { %v1936_v58 = vpop.f32.mrb[5].mxu1 }
 0x2bd   :  { %v1937_v52 = vadd.f32 %v1936_v58, %v1935_v12 }
 0x2bf   :  { %v1434_v57 = vadd.f32 %v1937_v52, %v1296_v15 }
 0x2db   :  { %v1970_v50 = vpop.f32.mrb[6].mxu1 }
 0x2dc   :  { %v1971_v3 = vpop.f32.mrb[7].mxu1 }
 0x2dd   :  { %v1972_v40 = vadd.f32 %v1971_v3, %v1970_v50 }
 0x2df   :  { %v1542_v18 = vadd.f32 %v1972_v40, %v1434_v57 }
 0x2fb   :  { %v2005_v22 = vpop.f32.mrb[8].mxu1 }
 0x2fc   :  { %v2006_v34 = vpop.f32.mrb[9].mxu1 }
 0x2fd   :  { %v2007_v43 = vadd.f32 %v2006_v34, %v2005_v22 }
 0x2ff   :  { %v1710_v59 = vadd.f32 %v2007_v43, %v1542_v18 }
 0x31b   :  { %v2040_v10 = vpop.f32.mrb[10].mxu1 }
 0x31c   :  { %v2041_v4 = vpop.f32.mrb[11].mxu1 }
 0x31d   :  { %v2042_v23 = vadd.f32 %v2041_v4, %v2040_v10 }
 0x31f   :  { %v1814_v28 = vadd.f32 %v2042_v23, %v1710_v59 }
 0x321   :  { %1818 = vst.msk [vmem:[#allocation2] sm:$0xff] %vm1817_vm3, %v1814_v28 }
 0x322   :  { %2453 = shalt.err (!%p2450_p4)
}
 0x323   :  { %s2454_s8 = scalar_lea.hbm %s3553_s3, 128 }
 0x324   :  { %p2455_p5 = scmp.ne.s32.totalorder %s3553_s3, %s2454_s8  ;;  %p2458_p6 = scmp.lt.u32.totalorder %s2454_s8, %s3553_s3 }
 0x326   :  { %p2460_p7 = pnand %p2458_p6, %p2455_p5 }
 0x328   :  { %2463 = shalt.err (!%p2460_p7)
}
 0x329   :  { %1828 = dma.vmem_to_hbm [thread:$0]  %s1826_s4, 128, %s3553_s3, [#allocation3]  }
 0x32a   :  { %2464 = dma.done.wait [#allocation3], 128  }
 0x32b   :  { %2465 = vsyncadd [#allocation3], 4294967168 }
 0x32c   :  { %1832 = vsyncpa [#allocation3], 1 }

</bundles_post_ra>
